<compile_context>
chip_gen: v5e
topology: v5e:2x2
jax: 0.10.0
libtpu: 0.0.40
codegen_flags: <defaults>
</compile_context>

<pallas_src>
import jax
import jax.numpy as jnp
from jax.experimental import pallas as pl
from jax.experimental.pallas import tpu as pltpu


def _pick_batch_block(n, c):
    # Smallest B with n % B == 0 and C*B a multiple of 8 (full sublane packing
    # of the (C*B, H*W) working slab); fall back to the whole batch.
    for b in range(1, n + 1):
        if n % b == 0 and (c * b) % 8 == 0:
            return b
    return n


def _make_weight_cols(w_oihw, batch_block):
    """(C, C, 3, 3) OIHW conv weights -> (9, C, C*B, 1) per-sublane columns.

    Rows are channel-major within a block of B images (row = co*B + b).
    Entry [t, d, co*B + b, 0] = w[co, (co + d) % C, t // 3, t % 3], so inside
    the kernel the tap slab only needs a sublane roll by d*B (a per-image
    cyclic input-channel shift) before one lane-broadcast multiply-add.
    """
    c = w_oihw.shape[0]
    co = jnp.arange(c)
    taps = []
    for t in range(9):
        dh, dw = divmod(t, 3)
        per_d = []
        for d in range(c):
            ci = (co + d) % c
            wvec = w_oihw[co, ci, dh, dw]                 # (C,)
            per_d.append(jnp.repeat(wvec, batch_block))   # (C*B,)
        taps.append(jnp.stack(per_d))                     # (C, C*B)
    return jnp.stack(taps)[..., None].astype(jnp.float32)  # (9, C, C*B, 1)


def _make_resb_kernel(C, B, H, W):
    R, L = C * B, H * W

    def kernel(x_ref, wc1_ref, wc2_ref, o_ref):
        # x_ref / o_ref : (R, L) = (C*B, H*W), channel-major rows (co*B + b)
        # wc*_ref       : (9, C, R, 1) precomputed per-sublane weight columns
        x = x_ref[...]

        # conv pad=1 zero padding folded into per-tap validity masks (value
        # selects) -- no padded scratch, no halo-ring stores. Built once,
        # reused by both convs.
        pos = jax.lax.broadcasted_iota(jnp.int32, (R, L), 1)
        col = pos % W
        row_ok = {0: pos >= W, 2: pos < (H - 1) * W}
        col_ok = {0: col >= 1, 2: col <= W - 2}
        masks = {}
        for dh in range(3):
            for dw in range(3):
                m = row_ok.get(dh)
                if dw in col_ok:
                    m = col_ok[dw] if m is None else jnp.logical_and(m, col_ok[dw])
                masks[(dh, dw)] = m          # None => tap always valid (center)

        def conv3x3(src, wc_ref):
            # 3x3 / stride 1 / pad 1 / no-bias conv on the flat (R, L) slab:
            # lane roll (XLU) per tap + sublane roll (XLU) per channel offset
            # + per-sublane weight-column multiply-add (VPU, lane-dense).
            acc = None
            for dh in range(3):
                for dw in range(3):
                    t = dh * 3 + dw
                    off = (dh - 1) * W + (dw - 1)
                    tap = src if off == 0 else pltpu.roll(src, (-off) % L, axis=1)
                    m = masks[(dh, dw)]
                    if m is not None:
                        tap = jnp.where(m, tap, 0.0)
                    for d in range(C):
                        shifted = tap if d == 0 else pltpu.roll(
                            tap, (-d * B) % R, axis=0)
                        term = shifted * wc_ref[t, d]        # (R,L) * (R,1)
                        acc = term if acc is None else acc + term
            return acc

        h = conv3x3(x, wc1_ref)
        h = jnp.where(h > 0, h, 0.01 * h)   # LeakyReLU, PyTorch default 0.01
        y = conv3x3(h, wc2_ref)
        o_ref[...] = (y + x).astype(o_ref.dtype)   # residual add

    return kernel


def resb_pallas(x_nchw, w1_oihw, w2_oihw):
    """ResB forward. x: (N, C, H, W) f32; weights: (C, C, 3, 3) OIHW, no bias."""
    N, C, H, W = x_nchw.shape
    L = H * W
    B = _pick_batch_block(N, C)
    G = N // B
    R = C * B

    # Wrapper-side layout plumbing: flatten spatial onto lanes and pack the
    # B images' channels onto sublanes, channel-major within each block so the
    # per-image input-channel shift becomes a plain sublane roll in-kernel.
    x_blk = x_nchw.reshape(G, B, C, L).transpose(0, 2, 1, 3).reshape(G, R, L)

    wc1 = _make_weight_cols(w1_oihw, B)   # (9, C, R, 1), VMEM
    wc2 = _make_weight_cols(w2_oihw, B)

    out_blk = pl.pallas_call(
        _make_resb_kernel(C, B, H, W),
        out_shape=jax.ShapeDtypeStruct((G, R, L), x_nchw.dtype),
        grid=(G,),
        in_specs=[
            pl.BlockSpec((None, R, L), lambda g: (g, 0, 0)),
            pl.BlockSpec((9, C, R, 1), lambda g: (0, 0, 0, 0)),
            pl.BlockSpec((9, C, R, 1), lambda g: (0, 0, 0, 0)),
        ],
        out_specs=pl.BlockSpec((None, R, L), lambda g: (g, 0, 0)),
        compiler_params=pltpu.CompilerParams(
            dimension_semantics=("parallel",),   # v7x: image blocks over 2 TCs
            vmem_limit_bytes=32 * 1024 * 1024,   # footprint here is only ~1 MiB
        ),
    )(x_blk, wc1, wc2)

    # TODO(synk): add H-row tiling with a 2-row recompute halo once a single
    # (C*B, H*W) slab no longer fits VMEM (large SR frames); not needed here.
    return (out_blk.reshape(G, C, B, H, W)
                   .transpose(0, 2, 1, 3, 4)
                   .reshape(N, C, H, W))


def _resb_reference(x_nchw, w1_oihw, w2_oihw):
    """Pure-JAX reference (same semantics as the PyTorch module)."""
    dn = jax.lax.conv_dimension_numbers(x_nchw.shape, w1_oihw.shape,
                                        ("NCHW", "OIHW", "NCHW"))
    h = jax.lax.conv_general_dilated(x_nchw, w1_oihw, (1, 1), "SAME",
                                     dimension_numbers=dn)
    h = jnp.where(h > 0, h, 0.01 * h)
    h = jax.lax.conv_general_dilated(h, w2_oihw, (1, 1), "SAME",
                                     dimension_numbers=dn)
    return h + x_nchw


if __name__ == "__main__":
    key = jax.random.PRNGKey(0)
    k_x, k_w1, k_w2 = jax.random.split(key, 3)

    N, C, H, W = 2, 4, 16, 16  # small shapes consistent with ResB(channels=4)

    x_nchw = jax.random.normal(k_x, (N, C, H, W), jnp.float32)
    w1_oihw = jax.random.normal(k_w1, (C, C, 3, 3), jnp.float32) * 0.1
    w2_oihw = jax.random.normal(k_w2, (C, C, 3, 3), jnp.float32) * 0.1

    out = resb_pallas(x_nchw, w1_oihw, w2_oihw)
    out = jax.block_until_ready(out)

    ref = _resb_reference(x_nchw, w1_oihw, w2_oihw)
    assert jnp.allclose(out, ref, atol=1e-4, rtol=1e-4), "mismatch vs reference"

    print("KERNEL_OK")
</pallas_src>

<mosaic_0001>
module attributes {stable_mosaic.version = 11 : i64} {
  func.func @kernel(%arg0: i32, %arg1: memref<1x8x256xf32, #tpu.memory_space<vmem>>, %arg2: memref<9x4x8x1xf32, #tpu.memory_space<vmem>>, %arg3: memref<9x4x8x1xf32, #tpu.memory_space<vmem>>, %arg4: memref<1x8x256xf32, #tpu.memory_space<vmem>>) attributes {dimension_semantics = [#tpu.dimension_semantics<parallel>], iteration_bounds = array<i64: 1>, scalar_prefetch = 0 : i64, scratch_operands = 0 : i64, tpu.core_type = #tpu.core_type<tc>, window_params = [{transform_indices = @transform_0, window_bounds = array<i64: 1, 8, 256>}, {pipeline_mode = #tpu.pipeline_mode<synchronous>, transform_indices = @transform_1, window_bounds = array<i64: 9, 4, 8, 1>}, {pipeline_mode = #tpu.pipeline_mode<synchronous>, transform_indices = @transform_2, window_bounds = array<i64: 9, 4, 8, 1>}, {transform_indices = @transform_3, window_bounds = array<i64: 1, 8, 256>}]} {
    %c0 = arith.constant 0 : index
    %c0_0 = arith.constant 0 : index
    %c0_1 = arith.constant 0 : index
    %0 = vector.load %arg1[%c0, %c0_0, %c0_1] : memref<1x8x256xf32, #tpu.memory_space<vmem>>, vector<1x8x256xf32>
    %1 = vector.shape_cast %0 : vector<1x8x256xf32> to vector<8x256xf32>
    %2 = tpu.iota {dimensions = array<i32: 1>} : vector<8x256xi32>
    %c16_i32 = arith.constant 16 : i32
    %c0_i32 = arith.constant 0 : i32
    %3 = arith.cmpi eq, %c16_i32, %c0_i32 : i32
    %c1_i32 = arith.constant 1 : i32
    %4 = arith.select %3, %c1_i32, %c16_i32 : i32
    %5 = vector.broadcast %4 : i32 to vector<8x256xi32>
    %6 = arith.remsi %2, %5 : vector<8x256xi32>
    %c0_i32_2 = arith.constant 0 : i32
    %7 = vector.broadcast %c0_i32_2 : i32 to vector<8x256xi32>
    %8 = arith.cmpi ne, %6, %7 : vector<8x256xi32>
    %c0_i32_3 = arith.constant 0 : i32
    %9 = vector.broadcast %c0_i32_3 : i32 to vector<8x256xi32>
    %10 = arith.cmpi slt, %6, %9 : vector<8x256xi32>
    %c0_i32_4 = arith.constant 0 : i32
    %11 = arith.cmpi slt, %4, %c0_i32_4 : i32
    %12 = vector.broadcast %11 : i1 to vector<8x256xi1>
    %13 = vector.broadcast %12 : vector<8x256xi1> to vector<8x256xi1>
    %14 = arith.xori %10, %13 : vector<8x256xi1>
    %15 = arith.andi %14, %8 : vector<8x256xi1>
    %16 = vector.broadcast %4 : i32 to vector<8x256xi32>
    %17 = arith.addi %6, %16 : vector<8x256xi32>
    %18 = arith.select %15, %17, %6 : vector<8x256xi1>, vector<8x256xi32>
    %c16_i32_5 = arith.constant 16 : i32
    %19 = vector.broadcast %c16_i32_5 : i32 to vector<8x256xi32>
    %20 = arith.cmpi sge, %2, %19 : vector<8x256xi32>
    %c240_i32 = arith.constant 240 : i32
    %21 = vector.broadcast %c240_i32 : i32 to vector<8x256xi32>
    %22 = arith.cmpi slt, %2, %21 : vector<8x256xi32>
    %c1_i32_6 = arith.constant 1 : i32
    %23 = vector.broadcast %c1_i32_6 : i32 to vector<8x256xi32>
    %24 = arith.cmpi sge, %18, %23 : vector<8x256xi32>
    %c14_i32 = arith.constant 14 : i32
    %25 = vector.broadcast %c14_i32 : i32 to vector<8x256xi32>
    %26 = arith.cmpi sle, %18, %25 : vector<8x256xi32>
    %27 = arith.andi %20, %24 : vector<8x256xi1>
    %28 = arith.andi %20, %26 : vector<8x256xi1>
    %29 = arith.andi %22, %24 : vector<8x256xi1>
    %30 = arith.andi %22, %26 : vector<8x256xi1>
    %c17_i32 = arith.constant 17 : i32
    %31 = tpu.dynamic_rotate %1 by %c17_i32 dim 1 : vector<8x256xf32>, i32 -> vector<8x256xf32>
    %cst = arith.constant 0.000000e+00 : f32
    %32 = vector.broadcast %cst : f32 to vector<8x256xf32>
    %33 = arith.select %27, %31, %32 : vector<8x256xi1>, vector<8x256xf32>
    %c0_7 = arith.constant 0 : index
    %c0_8 = arith.constant 0 : index
    %c0_9 = arith.constant 0 : index
    %c0_10 = arith.constant 0 : index
    %34 = vector.load %arg2[%c0_7, %c0_8, %c0_9, %c0_10] : memref<9x4x8x1xf32, #tpu.memory_space<vmem>>, vector<1x1x8x1xf32>
    %35 = vector.shape_cast %34 : vector<1x1x8x1xf32> to vector<8x1xf32>
    %36 = vector.broadcast %35 : vector<8x1xf32> to vector<8x256xf32>
    %37 = arith.mulf %33, %36 : vector<8x256xf32>
    %c6_i32 = arith.constant 6 : i32
    %38 = tpu.dynamic_rotate %33 by %c6_i32 dim 0 : vector<8x256xf32>, i32 -> vector<8x256xf32>
    %c0_11 = arith.constant 0 : index
    %c1 = arith.constant 1 : index
    %c0_12 = arith.constant 0 : index
    %c0_13 = arith.constant 0 : index
    %39 = vector.load %arg2[%c0_11, %c1, %c0_12, %c0_13] : memref<9x4x8x1xf32, #tpu.memory_space<vmem>>, vector<1x1x8x1xf32>
    %40 = vector.shape_cast %39 : vector<1x1x8x1xf32> to vector<8x1xf32>
    %41 = vector.broadcast %40 : vector<8x1xf32> to vector<8x256xf32>
    %42 = arith.mulf %38, %41 : vector<8x256xf32>
    %43 = arith.addf %37, %42 : vector<8x256xf32>
    %c4_i32 = arith.constant 4 : i32
    %44 = tpu.dynamic_rotate %33 by %c4_i32 dim 0 : vector<8x256xf32>, i32 -> vector<8x256xf32>
    %c0_14 = arith.constant 0 : index
    %c2 = arith.constant 2 : index
    %c0_15 = arith.constant 0 : index
    %c0_16 = arith.constant 0 : index
    %45 = vector.load %arg2[%c0_14, %c2, %c0_15, %c0_16] : memref<9x4x8x1xf32, #tpu.memory_space<vmem>>, vector<1x1x8x1xf32>
    %46 = vector.shape_cast %45 : vector<1x1x8x1xf32> to vector<8x1xf32>
    %47 = vector.broadcast %46 : vector<8x1xf32> to vector<8x256xf32>
    %48 = arith.mulf %44, %47 : vector<8x256xf32>
    %49 = arith.addf %43, %48 : vector<8x256xf32>
    %c2_i32 = arith.constant 2 : i32
    %50 = tpu.dynamic_rotate %33 by %c2_i32 dim 0 : vector<8x256xf32>, i32 -> vector<8x256xf32>
    %c0_17 = arith.constant 0 : index
    %c3 = arith.constant 3 : index
    %c0_18 = arith.constant 0 : index
    %c0_19 = arith.constant 0 : index
    %51 = vector.load %arg2[%c0_17, %c3, %c0_18, %c0_19] : memref<9x4x8x1xf32, #tpu.memory_space<vmem>>, vector<1x1x8x1xf32>
    %52 = vector.shape_cast %51 : vector<1x1x8x1xf32> to vector<8x1xf32>
    %53 = vector.broadcast %52 : vector<8x1xf32> to vector<8x256xf32>
    %54 = arith.mulf %50, %53 : vector<8x256xf32>
    %55 = arith.addf %49, %54 : vector<8x256xf32>
    %c16_i32_20 = arith.constant 16 : i32
    %56 = tpu.dynamic_rotate %1 by %c16_i32_20 dim 1 : vector<8x256xf32>, i32 -> vector<8x256xf32>
    %cst_21 = arith.constant 0.000000e+00 : f32
    %57 = vector.broadcast %cst_21 : f32 to vector<8x256xf32>
    %58 = arith.select %20, %56, %57 : vector<8x256xi1>, vector<8x256xf32>
    %c1_22 = arith.constant 1 : index
    %c0_23 = arith.constant 0 : index
    %c0_24 = arith.constant 0 : index
    %c0_25 = arith.constant 0 : index
    %59 = vector.load %arg2[%c1_22, %c0_23, %c0_24, %c0_25] : memref<9x4x8x1xf32, #tpu.memory_space<vmem>>, vector<1x1x8x1xf32>
    %60 = vector.shape_cast %59 : vector<1x1x8x1xf32> to vector<8x1xf32>
    %61 = vector.broadcast %60 : vector<8x1xf32> to vector<8x256xf32>
    %62 = arith.mulf %58, %61 : vector<8x256xf32>
    %63 = arith.addf %55, %62 : vector<8x256xf32>
    %c6_i32_26 = arith.constant 6 : i32
    %64 = tpu.dynamic_rotate %58 by %c6_i32_26 dim 0 : vector<8x256xf32>, i32 -> vector<8x256xf32>
    %c1_27 = arith.constant 1 : index
    %c1_28 = arith.constant 1 : index
    %c0_29 = arith.constant 0 : index
    %c0_30 = arith.constant 0 : index
    %65 = vector.load %arg2[%c1_27, %c1_28, %c0_29, %c0_30] : memref<9x4x8x1xf32, #tpu.memory_space<vmem>>, vector<1x1x8x1xf32>
    %66 = vector.shape_cast %65 : vector<1x1x8x1xf32> to vector<8x1xf32>
    %67 = vector.broadcast %66 : vector<8x1xf32> to vector<8x256xf32>
    %68 = arith.mulf %64, %67 : vector<8x256xf32>
    %69 = arith.addf %63, %68 : vector<8x256xf32>
    %c4_i32_31 = arith.constant 4 : i32
    %70 = tpu.dynamic_rotate %58 by %c4_i32_31 dim 0 : vector<8x256xf32>, i32 -> vector<8x256xf32>
    %c1_32 = arith.constant 1 : index
    %c2_33 = arith.constant 2 : index
    %c0_34 = arith.constant 0 : index
    %c0_35 = arith.constant 0 : index
    %71 = vector.load %arg2[%c1_32, %c2_33, %c0_34, %c0_35] : memref<9x4x8x1xf32, #tpu.memory_space<vmem>>, vector<1x1x8x1xf32>
    %72 = vector.shape_cast %71 : vector<1x1x8x1xf32> to vector<8x1xf32>
    %73 = vector.broadcast %72 : vector<8x1xf32> to vector<8x256xf32>
    %74 = arith.mulf %70, %73 : vector<8x256xf32>
    %75 = arith.addf %69, %74 : vector<8x256xf32>
    %c2_i32_36 = arith.constant 2 : i32
    %76 = tpu.dynamic_rotate %58 by %c2_i32_36 dim 0 : vector<8x256xf32>, i32 -> vector<8x256xf32>
    %c1_37 = arith.constant 1 : index
    %c3_38 = arith.constant 3 : index
    %c0_39 = arith.constant 0 : index
    %c0_40 = arith.constant 0 : index
    %77 = vector.load %arg2[%c1_37, %c3_38, %c0_39, %c0_40] : memref<9x4x8x1xf32, #tpu.memory_space<vmem>>, vector<1x1x8x1xf32>
    %78 = vector.shape_cast %77 : vector<1x1x8x1xf32> to vector<8x1xf32>
    %79 = vector.broadcast %78 : vector<8x1xf32> to vector<8x256xf32>
    %80 = arith.mulf %76, %79 : vector<8x256xf32>
    %81 = arith.addf %75, %80 : vector<8x256xf32>
    %c15_i32 = arith.constant 15 : i32
    %82 = tpu.dynamic_rotate %1 by %c15_i32 dim 1 : vector<8x256xf32>, i32 -> vector<8x256xf32>
    %cst_41 = arith.constant 0.000000e+00 : f32
    %83 = vector.broadcast %cst_41 : f32 to vector<8x256xf32>
    %84 = arith.select %28, %82, %83 : vector<8x256xi1>, vector<8x256xf32>
    %c2_42 = arith.constant 2 : index
    %c0_43 = arith.constant 0 : index
    %c0_44 = arith.constant 0 : index
    %c0_45 = arith.constant 0 : index
    %85 = vector.load %arg2[%c2_42, %c0_43, %c0_44, %c0_45] : memref<9x4x8x1xf32, #tpu.memory_space<vmem>>, vector<1x1x8x1xf32>
    %86 = vector.shape_cast %85 : vector<1x1x8x1xf32> to vector<8x1xf32>
    %87 = vector.broadcast %86 : vector<8x1xf32> to vector<8x256xf32>
    %88 = arith.mulf %84, %87 : vector<8x256xf32>
    %89 = arith.addf %81, %88 : vector<8x256xf32>
    %c6_i32_46 = arith.constant 6 : i32
    %90 = tpu.dynamic_rotate %84 by %c6_i32_46 dim 0 : vector<8x256xf32>, i32 -> vector<8x256xf32>
    %c2_47 = arith.constant 2 : index
    %c1_48 = arith.constant 1 : index
    %c0_49 = arith.constant 0 : index
    %c0_50 = arith.constant 0 : index
    %91 = vector.load %arg2[%c2_47, %c1_48, %c0_49, %c0_50] : memref<9x4x8x1xf32, #tpu.memory_space<vmem>>, vector<1x1x8x1xf32>
    %92 = vector.shape_cast %91 : vector<1x1x8x1xf32> to vector<8x1xf32>
    %93 = vector.broadcast %92 : vector<8x1xf32> to vector<8x256xf32>
    %94 = arith.mulf %90, %93 : vector<8x256xf32>
    %95 = arith.addf %89, %94 : vector<8x256xf32>
    %c4_i32_51 = arith.constant 4 : i32
    %96 = tpu.dynamic_rotate %84 by %c4_i32_51 dim 0 : vector<8x256xf32>, i32 -> vector<8x256xf32>
    %c2_52 = arith.constant 2 : index
    %c2_53 = arith.constant 2 : index
    %c0_54 = arith.constant 0 : index
    %c0_55 = arith.constant 0 : index
    %97 = vector.load %arg2[%c2_52, %c2_53, %c0_54, %c0_55] : memref<9x4x8x1xf32, #tpu.memory_space<vmem>>, vector<1x1x8x1xf32>
    %98 = vector.shape_cast %97 : vector<1x1x8x1xf32> to vector<8x1xf32>
    %99 = vector.broadcast %98 : vector<8x1xf32> to vector<8x256xf32>
    %100 = arith.mulf %96, %99 : vector<8x256xf32>
    %101 = arith.addf %95, %100 : vector<8x256xf32>
    %c2_i32_56 = arith.constant 2 : i32
    %102 = tpu.dynamic_rotate %84 by %c2_i32_56 dim 0 : vector<8x256xf32>, i32 -> vector<8x256xf32>
    %c2_57 = arith.constant 2 : index
    %c3_58 = arith.constant 3 : index
    %c0_59 = arith.constant 0 : index
    %c0_60 = arith.constant 0 : index
    %103 = vector.load %arg2[%c2_57, %c3_58, %c0_59, %c0_60] : memref<9x4x8x1xf32, #tpu.memory_space<vmem>>, vector<1x1x8x1xf32>
    %104 = vector.shape_cast %103 : vector<1x1x8x1xf32> to vector<8x1xf32>
    %105 = vector.broadcast %104 : vector<8x1xf32> to vector<8x256xf32>
    %106 = arith.mulf %102, %105 : vector<8x256xf32>
    %107 = arith.addf %101, %106 : vector<8x256xf32>
    %c1_i32_61 = arith.constant 1 : i32
    %108 = tpu.dynamic_rotate %1 by %c1_i32_61 dim 1 : vector<8x256xf32>, i32 -> vector<8x256xf32>
    %cst_62 = arith.constant 0.000000e+00 : f32
    %109 = vector.broadcast %cst_62 : f32 to vector<8x256xf32>
    %110 = arith.select %24, %108, %109 : vector<8x256xi1>, vector<8x256xf32>
    %c3_63 = arith.constant 3 : index
    %c0_64 = arith.constant 0 : index
    %c0_65 = arith.constant 0 : index
    %c0_66 = arith.constant 0 : index
    %111 = vector.load %arg2[%c3_63, %c0_64, %c0_65, %c0_66] : memref<9x4x8x1xf32, #tpu.memory_space<vmem>>, vector<1x1x8x1xf32>
    %112 = vector.shape_cast %111 : vector<1x1x8x1xf32> to vector<8x1xf32>
    %113 = vector.broadcast %112 : vector<8x1xf32> to vector<8x256xf32>
    %114 = arith.mulf %110, %113 : vector<8x256xf32>
    %115 = arith.addf %107, %114 : vector<8x256xf32>
    %c6_i32_67 = arith.constant 6 : i32
    %116 = tpu.dynamic_rotate %110 by %c6_i32_67 dim 0 : vector<8x256xf32>, i32 -> vector<8x256xf32>
    %c3_68 = arith.constant 3 : index
    %c1_69 = arith.constant 1 : index
    %c0_70 = arith.constant 0 : index
    %c0_71 = arith.constant 0 : index
    %117 = vector.load %arg2[%c3_68, %c1_69, %c0_70, %c0_71] : memref<9x4x8x1xf32, #tpu.memory_space<vmem>>, vector<1x1x8x1xf32>
    %118 = vector.shape_cast %117 : vector<1x1x8x1xf32> to vector<8x1xf32>
    %119 = vector.broadcast %118 : vector<8x1xf32> to vector<8x256xf32>
    %120 = arith.mulf %116, %119 : vector<8x256xf32>
    %121 = arith.addf %115, %120 : vector<8x256xf32>
    %c4_i32_72 = arith.constant 4 : i32
    %122 = tpu.dynamic_rotate %110 by %c4_i32_72 dim 0 : vector<8x256xf32>, i32 -> vector<8x256xf32>
    %c3_73 = arith.constant 3 : index
    %c2_74 = arith.constant 2 : index
    %c0_75 = arith.constant 0 : index
    %c0_76 = arith.constant 0 : index
    %123 = vector.load %arg2[%c3_73, %c2_74, %c0_75, %c0_76] : memref<9x4x8x1xf32, #tpu.memory_space<vmem>>, vector<1x1x8x1xf32>
    %124 = vector.shape_cast %123 : vector<1x1x8x1xf32> to vector<8x1xf32>
    %125 = vector.broadcast %124 : vector<8x1xf32> to vector<8x256xf32>
    %126 = arith.mulf %122, %125 : vector<8x256xf32>
    %127 = arith.addf %121, %126 : vector<8x256xf32>
    %c2_i32_77 = arith.constant 2 : i32
    %128 = tpu.dynamic_rotate %110 by %c2_i32_77 dim 0 : vector<8x256xf32>, i32 -> vector<8x256xf32>
    %c3_78 = arith.constant 3 : index
    %c3_79 = arith.constant 3 : index
    %c0_80 = arith.constant 0 : index
    %c0_81 = arith.constant 0 : index
    %129 = vector.load %arg2[%c3_78, %c3_79, %c0_80, %c0_81] : memref<9x4x8x1xf32, #tpu.memory_space<vmem>>, vector<1x1x8x1xf32>
    %130 = vector.shape_cast %129 : vector<1x1x8x1xf32> to vector<8x1xf32>
    %131 = vector.broadcast %130 : vector<8x1xf32> to vector<8x256xf32>
    %132 = arith.mulf %128, %131 : vector<8x256xf32>
    %133 = arith.addf %127, %132 : vector<8x256xf32>
    %c4 = arith.constant 4 : index
    %c0_82 = arith.constant 0 : index
    %c0_83 = arith.constant 0 : index
    %c0_84 = arith.constant 0 : index
    %134 = vector.load %arg2[%c4, %c0_82, %c0_83, %c0_84] : memref<9x4x8x1xf32, #tpu.memory_space<vmem>>, vector<1x1x8x1xf32>
    %135 = vector.shape_cast %134 : vector<1x1x8x1xf32> to vector<8x1xf32>
    %136 = vector.broadcast %135 : vector<8x1xf32> to vector<8x256xf32>
    %137 = arith.mulf %1, %136 : vector<8x256xf32>
    %138 = arith.addf %133, %137 : vector<8x256xf32>
    %c6_i32_85 = arith.constant 6 : i32
    %139 = tpu.dynamic_rotate %1 by %c6_i32_85 dim 0 : vector<8x256xf32>, i32 -> vector<8x256xf32>
    %c4_86 = arith.constant 4 : index
    %c1_87 = arith.constant 1 : index
    %c0_88 = arith.constant 0 : index
    %c0_89 = arith.constant 0 : index
    %140 = vector.load %arg2[%c4_86, %c1_87, %c0_88, %c0_89] : memref<9x4x8x1xf32, #tpu.memory_space<vmem>>, vector<1x1x8x1xf32>
    %141 = vector.shape_cast %140 : vector<1x1x8x1xf32> to vector<8x1xf32>
    %142 = vector.broadcast %141 : vector<8x1xf32> to vector<8x256xf32>
    %143 = arith.mulf %139, %142 : vector<8x256xf32>
    %144 = arith.addf %138, %143 : vector<8x256xf32>
    %c4_i32_90 = arith.constant 4 : i32
    %145 = tpu.dynamic_rotate %1 by %c4_i32_90 dim 0 : vector<8x256xf32>, i32 -> vector<8x256xf32>
    %c4_91 = arith.constant 4 : index
    %c2_92 = arith.constant 2 : index
    %c0_93 = arith.constant 0 : index
    %c0_94 = arith.constant 0 : index
    %146 = vector.load %arg2[%c4_91, %c2_92, %c0_93, %c0_94] : memref<9x4x8x1xf32, #tpu.memory_space<vmem>>, vector<1x1x8x1xf32>
    %147 = vector.shape_cast %146 : vector<1x1x8x1xf32> to vector<8x1xf32>
    %148 = vector.broadcast %147 : vector<8x1xf32> to vector<8x256xf32>
    %149 = arith.mulf %145, %148 : vector<8x256xf32>
    %150 = arith.addf %144, %149 : vector<8x256xf32>
    %c2_i32_95 = arith.constant 2 : i32
    %151 = tpu.dynamic_rotate %1 by %c2_i32_95 dim 0 : vector<8x256xf32>, i32 -> vector<8x256xf32>
    %c4_96 = arith.constant 4 : index
    %c3_97 = arith.constant 3 : index
    %c0_98 = arith.constant 0 : index
    %c0_99 = arith.constant 0 : index
    %152 = vector.load %arg2[%c4_96, %c3_97, %c0_98, %c0_99] : memref<9x4x8x1xf32, #tpu.memory_space<vmem>>, vector<1x1x8x1xf32>
    %153 = vector.shape_cast %152 : vector<1x1x8x1xf32> to vector<8x1xf32>
    %154 = vector.broadcast %153 : vector<8x1xf32> to vector<8x256xf32>
    %155 = arith.mulf %151, %154 : vector<8x256xf32>
    %156 = arith.addf %150, %155 : vector<8x256xf32>
    %c255_i32 = arith.constant 255 : i32
    %157 = tpu.dynamic_rotate %1 by %c255_i32 dim 1 : vector<8x256xf32>, i32 -> vector<8x256xf32>
    %cst_100 = arith.constant 0.000000e+00 : f32
    %158 = vector.broadcast %cst_100 : f32 to vector<8x256xf32>
    %159 = arith.select %26, %157, %158 : vector<8x256xi1>, vector<8x256xf32>
    %c5 = arith.constant 5 : index
    %c0_101 = arith.constant 0 : index
    %c0_102 = arith.constant 0 : index
    %c0_103 = arith.constant 0 : index
    %160 = vector.load %arg2[%c5, %c0_101, %c0_102, %c0_103] : memref<9x4x8x1xf32, #tpu.memory_space<vmem>>, vector<1x1x8x1xf32>
    %161 = vector.shape_cast %160 : vector<1x1x8x1xf32> to vector<8x1xf32>
    %162 = vector.broadcast %161 : vector<8x1xf32> to vector<8x256xf32>
    %163 = arith.mulf %159, %162 : vector<8x256xf32>
    %164 = arith.addf %156, %163 : vector<8x256xf32>
    %c6_i32_104 = arith.constant 6 : i32
    %165 = tpu.dynamic_rotate %159 by %c6_i32_104 dim 0 : vector<8x256xf32>, i32 -> vector<8x256xf32>
    %c5_105 = arith.constant 5 : index
    %c1_106 = arith.constant 1 : index
    %c0_107 = arith.constant 0 : index
    %c0_108 = arith.constant 0 : index
    %166 = vector.load %arg2[%c5_105, %c1_106, %c0_107, %c0_108] : memref<9x4x8x1xf32, #tpu.memory_space<vmem>>, vector<1x1x8x1xf32>
    %167 = vector.shape_cast %166 : vector<1x1x8x1xf32> to vector<8x1xf32>
    %168 = vector.broadcast %167 : vector<8x1xf32> to vector<8x256xf32>
    %169 = arith.mulf %165, %168 : vector<8x256xf32>
    %170 = arith.addf %164, %169 : vector<8x256xf32>
    %c4_i32_109 = arith.constant 4 : i32
    %171 = tpu.dynamic_rotate %159 by %c4_i32_109 dim 0 : vector<8x256xf32>, i32 -> vector<8x256xf32>
    %c5_110 = arith.constant 5 : index
    %c2_111 = arith.constant 2 : index
    %c0_112 = arith.constant 0 : index
    %c0_113 = arith.constant 0 : index
    %172 = vector.load %arg2[%c5_110, %c2_111, %c0_112, %c0_113] : memref<9x4x8x1xf32, #tpu.memory_space<vmem>>, vector<1x1x8x1xf32>
    %173 = vector.shape_cast %172 : vector<1x1x8x1xf32> to vector<8x1xf32>
    %174 = vector.broadcast %173 : vector<8x1xf32> to vector<8x256xf32>
    %175 = arith.mulf %171, %174 : vector<8x256xf32>
    %176 = arith.addf %170, %175 : vector<8x256xf32>
    %c2_i32_114 = arith.constant 2 : i32
    %177 = tpu.dynamic_rotate %159 by %c2_i32_114 dim 0 : vector<8x256xf32>, i32 -> vector<8x256xf32>
    %c5_115 = arith.constant 5 : index
    %c3_116 = arith.constant 3 : index
    %c0_117 = arith.constant 0 : index
    %c0_118 = arith.constant 0 : index
    %178 = vector.load %arg2[%c5_115, %c3_116, %c0_117, %c0_118] : memref<9x4x8x1xf32, #tpu.memory_space<vmem>>, vector<1x1x8x1xf32>
    %179 = vector.shape_cast %178 : vector<1x1x8x1xf32> to vector<8x1xf32>
    %180 = vector.broadcast %179 : vector<8x1xf32> to vector<8x256xf32>
    %181 = arith.mulf %177, %180 : vector<8x256xf32>
    %182 = arith.addf %176, %181 : vector<8x256xf32>
    %c241_i32 = arith.constant 241 : i32
    %183 = tpu.dynamic_rotate %1 by %c241_i32 dim 1 : vector<8x256xf32>, i32 -> vector<8x256xf32>
    %cst_119 = arith.constant 0.000000e+00 : f32
    %184 = vector.broadcast %cst_119 : f32 to vector<8x256xf32>
    %185 = arith.select %29, %183, %184 : vector<8x256xi1>, vector<8x256xf32>
    %c6 = arith.constant 6 : index
    %c0_120 = arith.constant 0 : index
    %c0_121 = arith.constant 0 : index
    %c0_122 = arith.constant 0 : index
    %186 = vector.load %arg2[%c6, %c0_120, %c0_121, %c0_122] : memref<9x4x8x1xf32, #tpu.memory_space<vmem>>, vector<1x1x8x1xf32>
    %187 = vector.shape_cast %186 : vector<1x1x8x1xf32> to vector<8x1xf32>
    %188 = vector.broadcast %187 : vector<8x1xf32> to vector<8x256xf32>
    %189 = arith.mulf %185, %188 : vector<8x256xf32>
    %190 = arith.addf %182, %189 : vector<8x256xf32>
    %c6_i32_123 = arith.constant 6 : i32
    %191 = tpu.dynamic_rotate %185 by %c6_i32_123 dim 0 : vector<8x256xf32>, i32 -> vector<8x256xf32>
    %c6_124 = arith.constant 6 : index
    %c1_125 = arith.constant 1 : index
    %c0_126 = arith.constant 0 : index
    %c0_127 = arith.constant 0 : index
    %192 = vector.load %arg2[%c6_124, %c1_125, %c0_126, %c0_127] : memref<9x4x8x1xf32, #tpu.memory_space<vmem>>, vector<1x1x8x1xf32>
    %193 = vector.shape_cast %192 : vector<1x1x8x1xf32> to vector<8x1xf32>
    %194 = vector.broadcast %193 : vector<8x1xf32> to vector<8x256xf32>
    %195 = arith.mulf %191, %194 : vector<8x256xf32>
    %196 = arith.addf %190, %195 : vector<8x256xf32>
    %c4_i32_128 = arith.constant 4 : i32
    %197 = tpu.dynamic_rotate %185 by %c4_i32_128 dim 0 : vector<8x256xf32>, i32 -> vector<8x256xf32>
    %c6_129 = arith.constant 6 : index
    %c2_130 = arith.constant 2 : index
    %c0_131 = arith.constant 0 : index
    %c0_132 = arith.constant 0 : index
    %198 = vector.load %arg2[%c6_129, %c2_130, %c0_131, %c0_132] : memref<9x4x8x1xf32, #tpu.memory_space<vmem>>, vector<1x1x8x1xf32>
    %199 = vector.shape_cast %198 : vector<1x1x8x1xf32> to vector<8x1xf32>
    %200 = vector.broadcast %199 : vector<8x1xf32> to vector<8x256xf32>
    %201 = arith.mulf %197, %200 : vector<8x256xf32>
    %202 = arith.addf %196, %201 : vector<8x256xf32>
    %c2_i32_133 = arith.constant 2 : i32
    %203 = tpu.dynamic_rotate %185 by %c2_i32_133 dim 0 : vector<8x256xf32>, i32 -> vector<8x256xf32>
    %c6_134 = arith.constant 6 : index
    %c3_135 = arith.constant 3 : index
    %c0_136 = arith.constant 0 : index
    %c0_137 = arith.constant 0 : index
    %204 = vector.load %arg2[%c6_134, %c3_135, %c0_136, %c0_137] : memref<9x4x8x1xf32, #tpu.memory_space<vmem>>, vector<1x1x8x1xf32>
    %205 = vector.shape_cast %204 : vector<1x1x8x1xf32> to vector<8x1xf32>
    %206 = vector.broadcast %205 : vector<8x1xf32> to vector<8x256xf32>
    %207 = arith.mulf %203, %206 : vector<8x256xf32>
    %208 = arith.addf %202, %207 : vector<8x256xf32>
    %c240_i32_138 = arith.constant 240 : i32
    %209 = tpu.dynamic_rotate %1 by %c240_i32_138 dim 1 : vector<8x256xf32>, i32 -> vector<8x256xf32>
    %cst_139 = arith.constant 0.000000e+00 : f32
    %210 = vector.broadcast %cst_139 : f32 to vector<8x256xf32>
    %211 = arith.select %22, %209, %210 : vector<8x256xi1>, vector<8x256xf32>
    %c7 = arith.constant 7 : index
    %c0_140 = arith.constant 0 : index
    %c0_141 = arith.constant 0 : index
    %c0_142 = arith.constant 0 : index
    %212 = vector.load %arg2[%c7, %c0_140, %c0_141, %c0_142] : memref<9x4x8x1xf32, #tpu.memory_space<vmem>>, vector<1x1x8x1xf32>
    %213 = vector.shape_cast %212 : vector<1x1x8x1xf32> to vector<8x1xf32>
    %214 = vector.broadcast %213 : vector<8x1xf32> to vector<8x256xf32>
    %215 = arith.mulf %211, %214 : vector<8x256xf32>
    %216 = arith.addf %208, %215 : vector<8x256xf32>
    %c6_i32_143 = arith.constant 6 : i32
    %217 = tpu.dynamic_rotate %211 by %c6_i32_143 dim 0 : vector<8x256xf32>, i32 -> vector<8x256xf32>
    %c7_144 = arith.constant 7 : index
    %c1_145 = arith.constant 1 : index
    %c0_146 = arith.constant 0 : index
    %c0_147 = arith.constant 0 : index
    %218 = vector.load %arg2[%c7_144, %c1_145, %c0_146, %c0_147] : memref<9x4x8x1xf32, #tpu.memory_space<vmem>>, vector<1x1x8x1xf32>
    %219 = vector.shape_cast %218 : vector<1x1x8x1xf32> to vector<8x1xf32>
    %220 = vector.broadcast %219 : vector<8x1xf32> to vector<8x256xf32>
    %221 = arith.mulf %217, %220 : vector<8x256xf32>
    %222 = arith.addf %216, %221 : vector<8x256xf32>
    %c4_i32_148 = arith.constant 4 : i32
    %223 = tpu.dynamic_rotate %211 by %c4_i32_148 dim 0 : vector<8x256xf32>, i32 -> vector<8x256xf32>
    %c7_149 = arith.constant 7 : index
    %c2_150 = arith.constant 2 : index
    %c0_151 = arith.constant 0 : index
    %c0_152 = arith.constant 0 : index
    %224 = vector.load %arg2[%c7_149, %c2_150, %c0_151, %c0_152] : memref<9x4x8x1xf32, #tpu.memory_space<vmem>>, vector<1x1x8x1xf32>
    %225 = vector.shape_cast %224 : vector<1x1x8x1xf32> to vector<8x1xf32>
    %226 = vector.broadcast %225 : vector<8x1xf32> to vector<8x256xf32>
    %227 = arith.mulf %223, %226 : vector<8x256xf32>
    %228 = arith.addf %222, %227 : vector<8x256xf32>
    %c2_i32_153 = arith.constant 2 : i32
    %229 = tpu.dynamic_rotate %211 by %c2_i32_153 dim 0 : vector<8x256xf32>, i32 -> vector<8x256xf32>
    %c7_154 = arith.constant 7 : index
    %c3_155 = arith.constant 3 : index
    %c0_156 = arith.constant 0 : index
    %c0_157 = arith.constant 0 : index
    %230 = vector.load %arg2[%c7_154, %c3_155, %c0_156, %c0_157] : memref<9x4x8x1xf32, #tpu.memory_space<vmem>>, vector<1x1x8x1xf32>
    %231 = vector.shape_cast %230 : vector<1x1x8x1xf32> to vector<8x1xf32>
    %232 = vector.broadcast %231 : vector<8x1xf32> to vector<8x256xf32>
    %233 = arith.mulf %229, %232 : vector<8x256xf32>
    %234 = arith.addf %228, %233 : vector<8x256xf32>
    %c239_i32 = arith.constant 239 : i32
    %235 = tpu.dynamic_rotate %1 by %c239_i32 dim 1 : vector<8x256xf32>, i32 -> vector<8x256xf32>
    %cst_158 = arith.constant 0.000000e+00 : f32
    %236 = vector.broadcast %cst_158 : f32 to vector<8x256xf32>
    %237 = arith.select %30, %235, %236 : vector<8x256xi1>, vector<8x256xf32>
    %c8 = arith.constant 8 : index
    %c0_159 = arith.constant 0 : index
    %c0_160 = arith.constant 0 : index
    %c0_161 = arith.constant 0 : index
    %238 = vector.load %arg2[%c8, %c0_159, %c0_160, %c0_161] : memref<9x4x8x1xf32, #tpu.memory_space<vmem>>, vector<1x1x8x1xf32>
    %239 = vector.shape_cast %238 : vector<1x1x8x1xf32> to vector<8x1xf32>
    %240 = vector.broadcast %239 : vector<8x1xf32> to vector<8x256xf32>
    %241 = arith.mulf %237, %240 : vector<8x256xf32>
    %242 = arith.addf %234, %241 : vector<8x256xf32>
    %c6_i32_162 = arith.constant 6 : i32
    %243 = tpu.dynamic_rotate %237 by %c6_i32_162 dim 0 : vector<8x256xf32>, i32 -> vector<8x256xf32>
    %c8_163 = arith.constant 8 : index
    %c1_164 = arith.constant 1 : index
    %c0_165 = arith.constant 0 : index
    %c0_166 = arith.constant 0 : index
    %244 = vector.load %arg2[%c8_163, %c1_164, %c0_165, %c0_166] : memref<9x4x8x1xf32, #tpu.memory_space<vmem>>, vector<1x1x8x1xf32>
    %245 = vector.shape_cast %244 : vector<1x1x8x1xf32> to vector<8x1xf32>
    %246 = vector.broadcast %245 : vector<8x1xf32> to vector<8x256xf32>
    %247 = arith.mulf %243, %246 : vector<8x256xf32>
    %248 = arith.addf %242, %247 : vector<8x256xf32>
    %c4_i32_167 = arith.constant 4 : i32
    %249 = tpu.dynamic_rotate %237 by %c4_i32_167 dim 0 : vector<8x256xf32>, i32 -> vector<8x256xf32>
    %c8_168 = arith.constant 8 : index
    %c2_169 = arith.constant 2 : index
    %c0_170 = arith.constant 0 : index
    %c0_171 = arith.constant 0 : index
    %250 = vector.load %arg2[%c8_168, %c2_169, %c0_170, %c0_171] : memref<9x4x8x1xf32, #tpu.memory_space<vmem>>, vector<1x1x8x1xf32>
    %251 = vector.shape_cast %250 : vector<1x1x8x1xf32> to vector<8x1xf32>
    %252 = vector.broadcast %251 : vector<8x1xf32> to vector<8x256xf32>
    %253 = arith.mulf %249, %252 : vector<8x256xf32>
    %254 = arith.addf %248, %253 : vector<8x256xf32>
    %c2_i32_172 = arith.constant 2 : i32
    %255 = tpu.dynamic_rotate %237 by %c2_i32_172 dim 0 : vector<8x256xf32>, i32 -> vector<8x256xf32>
    %c8_173 = arith.constant 8 : index
    %c3_174 = arith.constant 3 : index
    %c0_175 = arith.constant 0 : index
    %c0_176 = arith.constant 0 : index
    %256 = vector.load %arg2[%c8_173, %c3_174, %c0_175, %c0_176] : memref<9x4x8x1xf32, #tpu.memory_space<vmem>>, vector<1x1x8x1xf32>
    %257 = vector.shape_cast %256 : vector<1x1x8x1xf32> to vector<8x1xf32>
    %258 = vector.broadcast %257 : vector<8x1xf32> to vector<8x256xf32>
    %259 = arith.mulf %255, %258 : vector<8x256xf32>
    %260 = arith.addf %254, %259 : vector<8x256xf32>
    %cst_177 = arith.constant 0.000000e+00 : f32
    %261 = vector.broadcast %cst_177 : f32 to vector<8x256xf32>
    %262 = arith.cmpf ogt, %260, %261 : vector<8x256xf32>
    %cst_178 = arith.constant 0.00999999977 : f32
    %263 = vector.broadcast %cst_178 : f32 to vector<8x256xf32>
    %264 = arith.mulf %263, %260 : vector<8x256xf32>
    %265 = arith.select %262, %260, %264 : vector<8x256xi1>, vector<8x256xf32>
    %c17_i32_179 = arith.constant 17 : i32
    %266 = tpu.dynamic_rotate %265 by %c17_i32_179 dim 1 : vector<8x256xf32>, i32 -> vector<8x256xf32>
    %cst_180 = arith.constant 0.000000e+00 : f32
    %267 = vector.broadcast %cst_180 : f32 to vector<8x256xf32>
    %268 = arith.select %27, %266, %267 : vector<8x256xi1>, vector<8x256xf32>
    %c0_181 = arith.constant 0 : index
    %c0_182 = arith.constant 0 : index
    %c0_183 = arith.constant 0 : index
    %c0_184 = arith.constant 0 : index
    %269 = vector.load %arg3[%c0_181, %c0_182, %c0_183, %c0_184] : memref<9x4x8x1xf32, #tpu.memory_space<vmem>>, vector<1x1x8x1xf32>
    %270 = vector.shape_cast %269 : vector<1x1x8x1xf32> to vector<8x1xf32>
    %271 = vector.broadcast %270 : vector<8x1xf32> to vector<8x256xf32>
    %272 = arith.mulf %268, %271 : vector<8x256xf32>
    %c6_i32_185 = arith.constant 6 : i32
    %273 = tpu.dynamic_rotate %268 by %c6_i32_185 dim 0 : vector<8x256xf32>, i32 -> vector<8x256xf32>
    %c0_186 = arith.constant 0 : index
    %c1_187 = arith.constant 1 : index
    %c0_188 = arith.constant 0 : index
    %c0_189 = arith.constant 0 : index
    %274 = vector.load %arg3[%c0_186, %c1_187, %c0_188, %c0_189] : memref<9x4x8x1xf32, #tpu.memory_space<vmem>>, vector<1x1x8x1xf32>
    %275 = vector.shape_cast %274 : vector<1x1x8x1xf32> to vector<8x1xf32>
    %276 = vector.broadcast %275 : vector<8x1xf32> to vector<8x256xf32>
    %277 = arith.mulf %273, %276 : vector<8x256xf32>
    %278 = arith.addf %272, %277 : vector<8x256xf32>
    %c4_i32_190 = arith.constant 4 : i32
    %279 = tpu.dynamic_rotate %268 by %c4_i32_190 dim 0 : vector<8x256xf32>, i32 -> vector<8x256xf32>
    %c0_191 = arith.constant 0 : index
    %c2_192 = arith.constant 2 : index
    %c0_193 = arith.constant 0 : index
    %c0_194 = arith.constant 0 : index
    %280 = vector.load %arg3[%c0_191, %c2_192, %c0_193, %c0_194] : memref<9x4x8x1xf32, #tpu.memory_space<vmem>>, vector<1x1x8x1xf32>
    %281 = vector.shape_cast %280 : vector<1x1x8x1xf32> to vector<8x1xf32>
    %282 = vector.broadcast %281 : vector<8x1xf32> to vector<8x256xf32>
    %283 = arith.mulf %279, %282 : vector<8x256xf32>
    %284 = arith.addf %278, %283 : vector<8x256xf32>
    %c2_i32_195 = arith.constant 2 : i32
    %285 = tpu.dynamic_rotate %268 by %c2_i32_195 dim 0 : vector<8x256xf32>, i32 -> vector<8x256xf32>
    %c0_196 = arith.constant 0 : index
    %c3_197 = arith.constant 3 : index
    %c0_198 = arith.constant 0 : index
    %c0_199 = arith.constant 0 : index
    %286 = vector.load %arg3[%c0_196, %c3_197, %c0_198, %c0_199] : memref<9x4x8x1xf32, #tpu.memory_space<vmem>>, vector<1x1x8x1xf32>
    %287 = vector.shape_cast %286 : vector<1x1x8x1xf32> to vector<8x1xf32>
    %288 = vector.broadcast %287 : vector<8x1xf32> to vector<8x256xf32>
    %289 = arith.mulf %285, %288 : vector<8x256xf32>
    %290 = arith.addf %284, %289 : vector<8x256xf32>
    %c16_i32_200 = arith.constant 16 : i32
    %291 = tpu.dynamic_rotate %265 by %c16_i32_200 dim 1 : vector<8x256xf32>, i32 -> vector<8x256xf32>
    %cst_201 = arith.constant 0.000000e+00 : f32
    %292 = vector.broadcast %cst_201 : f32 to vector<8x256xf32>
    %293 = arith.select %20, %291, %292 : vector<8x256xi1>, vector<8x256xf32>
    %c1_202 = arith.constant 1 : index
    %c0_203 = arith.constant 0 : index
    %c0_204 = arith.constant 0 : index
    %c0_205 = arith.constant 0 : index
    %294 = vector.load %arg3[%c1_202, %c0_203, %c0_204, %c0_205] : memref<9x4x8x1xf32, #tpu.memory_space<vmem>>, vector<1x1x8x1xf32>
    %295 = vector.shape_cast %294 : vector<1x1x8x1xf32> to vector<8x1xf32>
    %296 = vector.broadcast %295 : vector<8x1xf32> to vector<8x256xf32>
    %297 = arith.mulf %293, %296 : vector<8x256xf32>
    %298 = arith.addf %290, %297 : vector<8x256xf32>
    %c6_i32_206 = arith.constant 6 : i32
    %299 = tpu.dynamic_rotate %293 by %c6_i32_206 dim 0 : vector<8x256xf32>, i32 -> vector<8x256xf32>
    %c1_207 = arith.constant 1 : index
    %c1_208 = arith.constant 1 : index
    %c0_209 = arith.constant 0 : index
    %c0_210 = arith.constant 0 : index
    %300 = vector.load %arg3[%c1_207, %c1_208, %c0_209, %c0_210] : memref<9x4x8x1xf32, #tpu.memory_space<vmem>>, vector<1x1x8x1xf32>
    %301 = vector.shape_cast %300 : vector<1x1x8x1xf32> to vector<8x1xf32>
    %302 = vector.broadcast %301 : vector<8x1xf32> to vector<8x256xf32>
    %303 = arith.mulf %299, %302 : vector<8x256xf32>
    %304 = arith.addf %298, %303 : vector<8x256xf32>
    %c4_i32_211 = arith.constant 4 : i32
    %305 = tpu.dynamic_rotate %293 by %c4_i32_211 dim 0 : vector<8x256xf32>, i32 -> vector<8x256xf32>
    %c1_212 = arith.constant 1 : index
    %c2_213 = arith.constant 2 : index
    %c0_214 = arith.constant 0 : index
    %c0_215 = arith.constant 0 : index
    %306 = vector.load %arg3[%c1_212, %c2_213, %c0_214, %c0_215] : memref<9x4x8x1xf32, #tpu.memory_space<vmem>>, vector<1x1x8x1xf32>
    %307 = vector.shape_cast %306 : vector<1x1x8x1xf32> to vector<8x1xf32>
    %308 = vector.broadcast %307 : vector<8x1xf32> to vector<8x256xf32>
    %309 = arith.mulf %305, %308 : vector<8x256xf32>
    %310 = arith.addf %304, %309 : vector<8x256xf32>
    %c2_i32_216 = arith.constant 2 : i32
    %311 = tpu.dynamic_rotate %293 by %c2_i32_216 dim 0 : vector<8x256xf32>, i32 -> vector<8x256xf32>
    %c1_217 = arith.constant 1 : index
    %c3_218 = arith.constant 3 : index
    %c0_219 = arith.constant 0 : index
    %c0_220 = arith.constant 0 : index
    %312 = vector.load %arg3[%c1_217, %c3_218, %c0_219, %c0_220] : memref<9x4x8x1xf32, #tpu.memory_space<vmem>>, vector<1x1x8x1xf32>
    %313 = vector.shape_cast %312 : vector<1x1x8x1xf32> to vector<8x1xf32>
    %314 = vector.broadcast %313 : vector<8x1xf32> to vector<8x256xf32>
    %315 = arith.mulf %311, %314 : vector<8x256xf32>
    %316 = arith.addf %310, %315 : vector<8x256xf32>
    %c15_i32_221 = arith.constant 15 : i32
    %317 = tpu.dynamic_rotate %265 by %c15_i32_221 dim 1 : vector<8x256xf32>, i32 -> vector<8x256xf32>
    %cst_222 = arith.constant 0.000000e+00 : f32
    %318 = vector.broadcast %cst_222 : f32 to vector<8x256xf32>
    %319 = arith.select %28, %317, %318 : vector<8x256xi1>, vector<8x256xf32>
    %c2_223 = arith.constant 2 : index
    %c0_224 = arith.constant 0 : index
    %c0_225 = arith.constant 0 : index
    %c0_226 = arith.constant 0 : index
    %320 = vector.load %arg3[%c2_223, %c0_224, %c0_225, %c0_226] : memref<9x4x8x1xf32, #tpu.memory_space<vmem>>, vector<1x1x8x1xf32>
    %321 = vector.shape_cast %320 : vector<1x1x8x1xf32> to vector<8x1xf32>
    %322 = vector.broadcast %321 : vector<8x1xf32> to vector<8x256xf32>
    %323 = arith.mulf %319, %322 : vector<8x256xf32>
    %324 = arith.addf %316, %323 : vector<8x256xf32>
    %c6_i32_227 = arith.constant 6 : i32
    %325 = tpu.dynamic_rotate %319 by %c6_i32_227 dim 0 : vector<8x256xf32>, i32 -> vector<8x256xf32>
    %c2_228 = arith.constant 2 : index
    %c1_229 = arith.constant 1 : index
    %c0_230 = arith.constant 0 : index
    %c0_231 = arith.constant 0 : index
    %326 = vector.load %arg3[%c2_228, %c1_229, %c0_230, %c0_231] : memref<9x4x8x1xf32, #tpu.memory_space<vmem>>, vector<1x1x8x1xf32>
    %327 = vector.shape_cast %326 : vector<1x1x8x1xf32> to vector<8x1xf32>
    %328 = vector.broadcast %327 : vector<8x1xf32> to vector<8x256xf32>
    %329 = arith.mulf %325, %328 : vector<8x256xf32>
    %330 = arith.addf %324, %329 : vector<8x256xf32>
    %c4_i32_232 = arith.constant 4 : i32
    %331 = tpu.dynamic_rotate %319 by %c4_i32_232 dim 0 : vector<8x256xf32>, i32 -> vector<8x256xf32>
    %c2_233 = arith.constant 2 : index
    %c2_234 = arith.constant 2 : index
    %c0_235 = arith.constant 0 : index
    %c0_236 = arith.constant 0 : index
    %332 = vector.load %arg3[%c2_233, %c2_234, %c0_235, %c0_236] : memref<9x4x8x1xf32, #tpu.memory_space<vmem>>, vector<1x1x8x1xf32>
    %333 = vector.shape_cast %332 : vector<1x1x8x1xf32> to vector<8x1xf32>
    %334 = vector.broadcast %333 : vector<8x1xf32> to vector<8x256xf32>
    %335 = arith.mulf %331, %334 : vector<8x256xf32>
    %336 = arith.addf %330, %335 : vector<8x256xf32>
    %c2_i32_237 = arith.constant 2 : i32
    %337 = tpu.dynamic_rotate %319 by %c2_i32_237 dim 0 : vector<8x256xf32>, i32 -> vector<8x256xf32>
    %c2_238 = arith.constant 2 : index
    %c3_239 = arith.constant 3 : index
    %c0_240 = arith.constant 0 : index
    %c0_241 = arith.constant 0 : index
    %338 = vector.load %arg3[%c2_238, %c3_239, %c0_240, %c0_241] : memref<9x4x8x1xf32, #tpu.memory_space<vmem>>, vector<1x1x8x1xf32>
    %339 = vector.shape_cast %338 : vector<1x1x8x1xf32> to vector<8x1xf32>
    %340 = vector.broadcast %339 : vector<8x1xf32> to vector<8x256xf32>
    %341 = arith.mulf %337, %340 : vector<8x256xf32>
    %342 = arith.addf %336, %341 : vector<8x256xf32>
    %c1_i32_242 = arith.constant 1 : i32
    %343 = tpu.dynamic_rotate %265 by %c1_i32_242 dim 1 : vector<8x256xf32>, i32 -> vector<8x256xf32>
    %cst_243 = arith.constant 0.000000e+00 : f32
    %344 = vector.broadcast %cst_243 : f32 to vector<8x256xf32>
    %345 = arith.select %24, %343, %344 : vector<8x256xi1>, vector<8x256xf32>
    %c3_244 = arith.constant 3 : index
    %c0_245 = arith.constant 0 : index
    %c0_246 = arith.constant 0 : index
    %c0_247 = arith.constant 0 : index
    %346 = vector.load %arg3[%c3_244, %c0_245, %c0_246, %c0_247] : memref<9x4x8x1xf32, #tpu.memory_space<vmem>>, vector<1x1x8x1xf32>
    %347 = vector.shape_cast %346 : vector<1x1x8x1xf32> to vector<8x1xf32>
    %348 = vector.broadcast %347 : vector<8x1xf32> to vector<8x256xf32>
    %349 = arith.mulf %345, %348 : vector<8x256xf32>
    %350 = arith.addf %342, %349 : vector<8x256xf32>
    %c6_i32_248 = arith.constant 6 : i32
    %351 = tpu.dynamic_rotate %345 by %c6_i32_248 dim 0 : vector<8x256xf32>, i32 -> vector<8x256xf32>
    %c3_249 = arith.constant 3 : index
    %c1_250 = arith.constant 1 : index
    %c0_251 = arith.constant 0 : index
    %c0_252 = arith.constant 0 : index
    %352 = vector.load %arg3[%c3_249, %c1_250, %c0_251, %c0_252] : memref<9x4x8x1xf32, #tpu.memory_space<vmem>>, vector<1x1x8x1xf32>
    %353 = vector.shape_cast %352 : vector<1x1x8x1xf32> to vector<8x1xf32>
    %354 = vector.broadcast %353 : vector<8x1xf32> to vector<8x256xf32>
    %355 = arith.mulf %351, %354 : vector<8x256xf32>
    %356 = arith.addf %350, %355 : vector<8x256xf32>
    %c4_i32_253 = arith.constant 4 : i32
    %357 = tpu.dynamic_rotate %345 by %c4_i32_253 dim 0 : vector<8x256xf32>, i32 -> vector<8x256xf32>
    %c3_254 = arith.constant 3 : index
    %c2_255 = arith.constant 2 : index
    %c0_256 = arith.constant 0 : index
    %c0_257 = arith.constant 0 : index
    %358 = vector.load %arg3[%c3_254, %c2_255, %c0_256, %c0_257] : memref<9x4x8x1xf32, #tpu.memory_space<vmem>>, vector<1x1x8x1xf32>
    %359 = vector.shape_cast %358 : vector<1x1x8x1xf32> to vector<8x1xf32>
    %360 = vector.broadcast %359 : vector<8x1xf32> to vector<8x256xf32>
    %361 = arith.mulf %357, %360 : vector<8x256xf32>
    %362 = arith.addf %356, %361 : vector<8x256xf32>
    %c2_i32_258 = arith.constant 2 : i32
    %363 = tpu.dynamic_rotate %345 by %c2_i32_258 dim 0 : vector<8x256xf32>, i32 -> vector<8x256xf32>
    %c3_259 = arith.constant 3 : index
    %c3_260 = arith.constant 3 : index
    %c0_261 = arith.constant 0 : index
    %c0_262 = arith.constant 0 : index
    %364 = vector.load %arg3[%c3_259, %c3_260, %c0_261, %c0_262] : memref<9x4x8x1xf32, #tpu.memory_space<vmem>>, vector<1x1x8x1xf32>
    %365 = vector.shape_cast %364 : vector<1x1x8x1xf32> to vector<8x1xf32>
    %366 = vector.broadcast %365 : vector<8x1xf32> to vector<8x256xf32>
    %367 = arith.mulf %363, %366 : vector<8x256xf32>
    %368 = arith.addf %362, %367 : vector<8x256xf32>
    %c4_263 = arith.constant 4 : index
    %c0_264 = arith.constant 0 : index
    %c0_265 = arith.constant 0 : index
    %c0_266 = arith.constant 0 : index
    %369 = vector.load %arg3[%c4_263, %c0_264, %c0_265, %c0_266] : memref<9x4x8x1xf32, #tpu.memory_space<vmem>>, vector<1x1x8x1xf32>
    %370 = vector.shape_cast %369 : vector<1x1x8x1xf32> to vector<8x1xf32>
    %371 = vector.broadcast %370 : vector<8x1xf32> to vector<8x256xf32>
    %372 = arith.mulf %265, %371 : vector<8x256xf32>
    %373 = arith.addf %368, %372 : vector<8x256xf32>
    %c6_i32_267 = arith.constant 6 : i32
    %374 = tpu.dynamic_rotate %265 by %c6_i32_267 dim 0 : vector<8x256xf32>, i32 -> vector<8x256xf32>
    %c4_268 = arith.constant 4 : index
    %c1_269 = arith.constant 1 : index
    %c0_270 = arith.constant 0 : index
    %c0_271 = arith.constant 0 : index
    %375 = vector.load %arg3[%c4_268, %c1_269, %c0_270, %c0_271] : memref<9x4x8x1xf32, #tpu.memory_space<vmem>>, vector<1x1x8x1xf32>
    %376 = vector.shape_cast %375 : vector<1x1x8x1xf32> to vector<8x1xf32>
    %377 = vector.broadcast %376 : vector<8x1xf32> to vector<8x256xf32>
    %378 = arith.mulf %374, %377 : vector<8x256xf32>
    %379 = arith.addf %373, %378 : vector<8x256xf32>
    %c4_i32_272 = arith.constant 4 : i32
    %380 = tpu.dynamic_rotate %265 by %c4_i32_272 dim 0 : vector<8x256xf32>, i32 -> vector<8x256xf32>
    %c4_273 = arith.constant 4 : index
    %c2_274 = arith.constant 2 : index
    %c0_275 = arith.constant 0 : index
    %c0_276 = arith.constant 0 : index
    %381 = vector.load %arg3[%c4_273, %c2_274, %c0_275, %c0_276] : memref<9x4x8x1xf32, #tpu.memory_space<vmem>>, vector<1x1x8x1xf32>
    %382 = vector.shape_cast %381 : vector<1x1x8x1xf32> to vector<8x1xf32>
    %383 = vector.broadcast %382 : vector<8x1xf32> to vector<8x256xf32>
    %384 = arith.mulf %380, %383 : vector<8x256xf32>
    %385 = arith.addf %379, %384 : vector<8x256xf32>
    %c2_i32_277 = arith.constant 2 : i32
    %386 = tpu.dynamic_rotate %265 by %c2_i32_277 dim 0 : vector<8x256xf32>, i32 -> vector<8x256xf32>
    %c4_278 = arith.constant 4 : index
    %c3_279 = arith.constant 3 : index
    %c0_280 = arith.constant 0 : index
    %c0_281 = arith.constant 0 : index
    %387 = vector.load %arg3[%c4_278, %c3_279, %c0_280, %c0_281] : memref<9x4x8x1xf32, #tpu.memory_space<vmem>>, vector<1x1x8x1xf32>
    %388 = vector.shape_cast %387 : vector<1x1x8x1xf32> to vector<8x1xf32>
    %389 = vector.broadcast %388 : vector<8x1xf32> to vector<8x256xf32>
    %390 = arith.mulf %386, %389 : vector<8x256xf32>
    %391 = arith.addf %385, %390 : vector<8x256xf32>
    %c255_i32_282 = arith.constant 255 : i32
    %392 = tpu.dynamic_rotate %265 by %c255_i32_282 dim 1 : vector<8x256xf32>, i32 -> vector<8x256xf32>
    %cst_283 = arith.constant 0.000000e+00 : f32
    %393 = vector.broadcast %cst_283 : f32 to vector<8x256xf32>
    %394 = arith.select %26, %392, %393 : vector<8x256xi1>, vector<8x256xf32>
    %c5_284 = arith.constant 5 : index
    %c0_285 = arith.constant 0 : index
    %c0_286 = arith.constant 0 : index
    %c0_287 = arith.constant 0 : index
    %395 = vector.load %arg3[%c5_284, %c0_285, %c0_286, %c0_287] : memref<9x4x8x1xf32, #tpu.memory_space<vmem>>, vector<1x1x8x1xf32>
    %396 = vector.shape_cast %395 : vector<1x1x8x1xf32> to vector<8x1xf32>
    %397 = vector.broadcast %396 : vector<8x1xf32> to vector<8x256xf32>
    %398 = arith.mulf %394, %397 : vector<8x256xf32>
    %399 = arith.addf %391, %398 : vector<8x256xf32>
    %c6_i32_288 = arith.constant 6 : i32
    %400 = tpu.dynamic_rotate %394 by %c6_i32_288 dim 0 : vector<8x256xf32>, i32 -> vector<8x256xf32>
    %c5_289 = arith.constant 5 : index
    %c1_290 = arith.constant 1 : index
    %c0_291 = arith.constant 0 : index
    %c0_292 = arith.constant 0 : index
    %401 = vector.load %arg3[%c5_289, %c1_290, %c0_291, %c0_292] : memref<9x4x8x1xf32, #tpu.memory_space<vmem>>, vector<1x1x8x1xf32>
    %402 = vector.shape_cast %401 : vector<1x1x8x1xf32> to vector<8x1xf32>
    %403 = vector.broadcast %402 : vector<8x1xf32> to vector<8x256xf32>
    %404 = arith.mulf %400, %403 : vector<8x256xf32>
    %405 = arith.addf %399, %404 : vector<8x256xf32>
    %c4_i32_293 = arith.constant 4 : i32
    %406 = tpu.dynamic_rotate %394 by %c4_i32_293 dim 0 : vector<8x256xf32>, i32 -> vector<8x256xf32>
    %c5_294 = arith.constant 5 : index
    %c2_295 = arith.constant 2 : index
    %c0_296 = arith.constant 0 : index
    %c0_297 = arith.constant 0 : index
    %407 = vector.load %arg3[%c5_294, %c2_295, %c0_296, %c0_297] : memref<9x4x8x1xf32, #tpu.memory_space<vmem>>, vector<1x1x8x1xf32>
    %408 = vector.shape_cast %407 : vector<1x1x8x1xf32> to vector<8x1xf32>
    %409 = vector.broadcast %408 : vector<8x1xf32> to vector<8x256xf32>
    %410 = arith.mulf %406, %409 : vector<8x256xf32>
    %411 = arith.addf %405, %410 : vector<8x256xf32>
    %c2_i32_298 = arith.constant 2 : i32
    %412 = tpu.dynamic_rotate %394 by %c2_i32_298 dim 0 : vector<8x256xf32>, i32 -> vector<8x256xf32>
    %c5_299 = arith.constant 5 : index
    %c3_300 = arith.constant 3 : index
    %c0_301 = arith.constant 0 : index
    %c0_302 = arith.constant 0 : index
    %413 = vector.load %arg3[%c5_299, %c3_300, %c0_301, %c0_302] : memref<9x4x8x1xf32, #tpu.memory_space<vmem>>, vector<1x1x8x1xf32>
    %414 = vector.shape_cast %413 : vector<1x1x8x1xf32> to vector<8x1xf32>
    %415 = vector.broadcast %414 : vector<8x1xf32> to vector<8x256xf32>
    %416 = arith.mulf %412, %415 : vector<8x256xf32>
    %417 = arith.addf %411, %416 : vector<8x256xf32>
    %c241_i32_303 = arith.constant 241 : i32
    %418 = tpu.dynamic_rotate %265 by %c241_i32_303 dim 1 : vector<8x256xf32>, i32 -> vector<8x256xf32>
    %cst_304 = arith.constant 0.000000e+00 : f32
    %419 = vector.broadcast %cst_304 : f32 to vector<8x256xf32>
    %420 = arith.select %29, %418, %419 : vector<8x256xi1>, vector<8x256xf32>
    %c6_305 = arith.constant 6 : index
    %c0_306 = arith.constant 0 : index
    %c0_307 = arith.constant 0 : index
    %c0_308 = arith.constant 0 : index
    %421 = vector.load %arg3[%c6_305, %c0_306, %c0_307, %c0_308] : memref<9x4x8x1xf32, #tpu.memory_space<vmem>>, vector<1x1x8x1xf32>
    %422 = vector.shape_cast %421 : vector<1x1x8x1xf32> to vector<8x1xf32>
    %423 = vector.broadcast %422 : vector<8x1xf32> to vector<8x256xf32>
    %424 = arith.mulf %420, %423 : vector<8x256xf32>
    %425 = arith.addf %417, %424 : vector<8x256xf32>
    %c6_i32_309 = arith.constant 6 : i32
    %426 = tpu.dynamic_rotate %420 by %c6_i32_309 dim 0 : vector<8x256xf32>, i32 -> vector<8x256xf32>
    %c6_310 = arith.constant 6 : index
    %c1_311 = arith.constant 1 : index
    %c0_312 = arith.constant 0 : index
    %c0_313 = arith.constant 0 : index
    %427 = vector.load %arg3[%c6_310, %c1_311, %c0_312, %c0_313] : memref<9x4x8x1xf32, #tpu.memory_space<vmem>>, vector<1x1x8x1xf32>
    %428 = vector.shape_cast %427 : vector<1x1x8x1xf32> to vector<8x1xf32>
    %429 = vector.broadcast %428 : vector<8x1xf32> to vector<8x256xf32>
    %430 = arith.mulf %426, %429 : vector<8x256xf32>
    %431 = arith.addf %425, %430 : vector<8x256xf32>
    %c4_i32_314 = arith.constant 4 : i32
    %432 = tpu.dynamic_rotate %420 by %c4_i32_314 dim 0 : vector<8x256xf32>, i32 -> vector<8x256xf32>
    %c6_315 = arith.constant 6 : index
    %c2_316 = arith.constant 2 : index
    %c0_317 = arith.constant 0 : index
    %c0_318 = arith.constant 0 : index
    %433 = vector.load %arg3[%c6_315, %c2_316, %c0_317, %c0_318] : memref<9x4x8x1xf32, #tpu.memory_space<vmem>>, vector<1x1x8x1xf32>
    %434 = vector.shape_cast %433 : vector<1x1x8x1xf32> to vector<8x1xf32>
    %435 = vector.broadcast %434 : vector<8x1xf32> to vector<8x256xf32>
    %436 = arith.mulf %432, %435 : vector<8x256xf32>
    %437 = arith.addf %431, %436 : vector<8x256xf32>
    %c2_i32_319 = arith.constant 2 : i32
    %438 = tpu.dynamic_rotate %420 by %c2_i32_319 dim 0 : vector<8x256xf32>, i32 -> vector<8x256xf32>
    %c6_320 = arith.constant 6 : index
    %c3_321 = arith.constant 3 : index
    %c0_322 = arith.constant 0 : index
    %c0_323 = arith.constant 0 : index
    %439 = vector.load %arg3[%c6_320, %c3_321, %c0_322, %c0_323] : memref<9x4x8x1xf32, #tpu.memory_space<vmem>>, vector<1x1x8x1xf32>
    %440 = vector.shape_cast %439 : vector<1x1x8x1xf32> to vector<8x1xf32>
    %441 = vector.broadcast %440 : vector<8x1xf32> to vector<8x256xf32>
    %442 = arith.mulf %438, %441 : vector<8x256xf32>
    %443 = arith.addf %437, %442 : vector<8x256xf32>
    %c240_i32_324 = arith.constant 240 : i32
    %444 = tpu.dynamic_rotate %265 by %c240_i32_324 dim 1 : vector<8x256xf32>, i32 -> vector<8x256xf32>
    %cst_325 = arith.constant 0.000000e+00 : f32
    %445 = vector.broadcast %cst_325 : f32 to vector<8x256xf32>
    %446 = arith.select %22, %444, %445 : vector<8x256xi1>, vector<8x256xf32>
    %c7_326 = arith.constant 7 : index
    %c0_327 = arith.constant 0 : index
    %c0_328 = arith.constant 0 : index
    %c0_329 = arith.constant 0 : index
    %447 = vector.load %arg3[%c7_326, %c0_327, %c0_328, %c0_329] : memref<9x4x8x1xf32, #tpu.memory_space<vmem>>, vector<1x1x8x1xf32>
    %448 = vector.shape_cast %447 : vector<1x1x8x1xf32> to vector<8x1xf32>
    %449 = vector.broadcast %448 : vector<8x1xf32> to vector<8x256xf32>
    %450 = arith.mulf %446, %449 : vector<8x256xf32>
    %451 = arith.addf %443, %450 : vector<8x256xf32>
    %c6_i32_330 = arith.constant 6 : i32
    %452 = tpu.dynamic_rotate %446 by %c6_i32_330 dim 0 : vector<8x256xf32>, i32 -> vector<8x256xf32>
    %c7_331 = arith.constant 7 : index
    %c1_332 = arith.constant 1 : index
    %c0_333 = arith.constant 0 : index
    %c0_334 = arith.constant 0 : index
    %453 = vector.load %arg3[%c7_331, %c1_332, %c0_333, %c0_334] : memref<9x4x8x1xf32, #tpu.memory_space<vmem>>, vector<1x1x8x1xf32>
    %454 = vector.shape_cast %453 : vector<1x1x8x1xf32> to vector<8x1xf32>
    %455 = vector.broadcast %454 : vector<8x1xf32> to vector<8x256xf32>
    %456 = arith.mulf %452, %455 : vector<8x256xf32>
    %457 = arith.addf %451, %456 : vector<8x256xf32>
    %c4_i32_335 = arith.constant 4 : i32
    %458 = tpu.dynamic_rotate %446 by %c4_i32_335 dim 0 : vector<8x256xf32>, i32 -> vector<8x256xf32>
    %c7_336 = arith.constant 7 : index
    %c2_337 = arith.constant 2 : index
    %c0_338 = arith.constant 0 : index
    %c0_339 = arith.constant 0 : index
    %459 = vector.load %arg3[%c7_336, %c2_337, %c0_338, %c0_339] : memref<9x4x8x1xf32, #tpu.memory_space<vmem>>, vector<1x1x8x1xf32>
    %460 = vector.shape_cast %459 : vector<1x1x8x1xf32> to vector<8x1xf32>
    %461 = vector.broadcast %460 : vector<8x1xf32> to vector<8x256xf32>
    %462 = arith.mulf %458, %461 : vector<8x256xf32>
    %463 = arith.addf %457, %462 : vector<8x256xf32>
    %c2_i32_340 = arith.constant 2 : i32
    %464 = tpu.dynamic_rotate %446 by %c2_i32_340 dim 0 : vector<8x256xf32>, i32 -> vector<8x256xf32>
    %c7_341 = arith.constant 7 : index
    %c3_342 = arith.constant 3 : index
    %c0_343 = arith.constant 0 : index
    %c0_344 = arith.constant 0 : index
    %465 = vector.load %arg3[%c7_341, %c3_342, %c0_343, %c0_344] : memref<9x4x8x1xf32, #tpu.memory_space<vmem>>, vector<1x1x8x1xf32>
    %466 = vector.shape_cast %465 : vector<1x1x8x1xf32> to vector<8x1xf32>
    %467 = vector.broadcast %466 : vector<8x1xf32> to vector<8x256xf32>
    %468 = arith.mulf %464, %467 : vector<8x256xf32>
    %469 = arith.addf %463, %468 : vector<8x256xf32>
    %c239_i32_345 = arith.constant 239 : i32
    %470 = tpu.dynamic_rotate %265 by %c239_i32_345 dim 1 : vector<8x256xf32>, i32 -> vector<8x256xf32>
    %cst_346 = arith.constant 0.000000e+00 : f32
    %471 = vector.broadcast %cst_346 : f32 to vector<8x256xf32>
    %472 = arith.select %30, %470, %471 : vector<8x256xi1>, vector<8x256xf32>
    %c8_347 = arith.constant 8 : index
    %c0_348 = arith.constant 0 : index
    %c0_349 = arith.constant 0 : index
    %c0_350 = arith.constant 0 : index
    %473 = vector.load %arg3[%c8_347, %c0_348, %c0_349, %c0_350] : memref<9x4x8x1xf32, #tpu.memory_space<vmem>>, vector<1x1x8x1xf32>
    %474 = vector.shape_cast %473 : vector<1x1x8x1xf32> to vector<8x1xf32>
    %475 = vector.broadcast %474 : vector<8x1xf32> to vector<8x256xf32>
    %476 = arith.mulf %472, %475 : vector<8x256xf32>
    %477 = arith.addf %469, %476 : vector<8x256xf32>
    %c6_i32_351 = arith.constant 6 : i32
    %478 = tpu.dynamic_rotate %472 by %c6_i32_351 dim 0 : vector<8x256xf32>, i32 -> vector<8x256xf32>
    %c8_352 = arith.constant 8 : index
    %c1_353 = arith.constant 1 : index
    %c0_354 = arith.constant 0 : index
    %c0_355 = arith.constant 0 : index
    %479 = vector.load %arg3[%c8_352, %c1_353, %c0_354, %c0_355] : memref<9x4x8x1xf32, #tpu.memory_space<vmem>>, vector<1x1x8x1xf32>
    %480 = vector.shape_cast %479 : vector<1x1x8x1xf32> to vector<8x1xf32>
    %481 = vector.broadcast %480 : vector<8x1xf32> to vector<8x256xf32>
    %482 = arith.mulf %478, %481 : vector<8x256xf32>
    %483 = arith.addf %477, %482 : vector<8x256xf32>
    %c4_i32_356 = arith.constant 4 : i32
    %484 = tpu.dynamic_rotate %472 by %c4_i32_356 dim 0 : vector<8x256xf32>, i32 -> vector<8x256xf32>
    %c8_357 = arith.constant 8 : index
    %c2_358 = arith.constant 2 : index
    %c0_359 = arith.constant 0 : index
    %c0_360 = arith.constant 0 : index
    %485 = vector.load %arg3[%c8_357, %c2_358, %c0_359, %c0_360] : memref<9x4x8x1xf32, #tpu.memory_space<vmem>>, vector<1x1x8x1xf32>
    %486 = vector.shape_cast %485 : vector<1x1x8x1xf32> to vector<8x1xf32>
    %487 = vector.broadcast %486 : vector<8x1xf32> to vector<8x256xf32>
    %488 = arith.mulf %484, %487 : vector<8x256xf32>
    %489 = arith.addf %483, %488 : vector<8x256xf32>
    %c2_i32_361 = arith.constant 2 : i32
    %490 = tpu.dynamic_rotate %472 by %c2_i32_361 dim 0 : vector<8x256xf32>, i32 -> vector<8x256xf32>
    %c8_362 = arith.constant 8 : index
    %c3_363 = arith.constant 3 : index
    %c0_364 = arith.constant 0 : index
    %c0_365 = arith.constant 0 : index
    %491 = vector.load %arg3[%c8_362, %c3_363, %c0_364, %c0_365] : memref<9x4x8x1xf32, #tpu.memory_space<vmem>>, vector<1x1x8x1xf32>
    %492 = vector.shape_cast %491 : vector<1x1x8x1xf32> to vector<8x1xf32>
    %493 = vector.broadcast %492 : vector<8x1xf32> to vector<8x256xf32>
    %494 = arith.mulf %490, %493 : vector<8x256xf32>
    %495 = arith.addf %489, %494 : vector<8x256xf32>
    %496 = arith.addf %495, %1 : vector<8x256xf32>
    %c0_366 = arith.constant 0 : index
    %c0_367 = arith.constant 0 : index
    %c0_368 = arith.constant 0 : index
    %497 = vector.load %arg4[%c0_366, %c0_367, %c0_368] : memref<1x8x256xf32, #tpu.memory_space<vmem>>, vector<1x8x256xf32>
    %498 = vector.shape_cast %497 : vector<1x8x256xf32> to vector<8x256xf32>
    %499 = vector.shape_cast %496 : vector<8x256xf32> to vector<1x8x256xf32>
    tpu.vector_store %arg4[%c0_366, %c0_367, %c0_368], %499 {strides = array<i32>} : memref<1x8x256xf32, #tpu.memory_space<vmem>>, vector<1x8x256xf32>,
    return
  }
  func.func @transform_0(%arg0: i32) -> (i32, i32, i32) {
    %c0_i32 = arith.constant 0 : i32
    %c0_i32_0 = arith.constant 0 : i32
    %c0_i32_1 = arith.constant 0 : i32
    return %arg0, %c0_i32, %c0_i32_0 : i32, i32, i32
  }
  func.func @transform_1(%arg0: i32) -> (i32, i32, i32, i32) {
    %c0_i32 = arith.constant 0 : i32
    %c0_i32_0 = arith.constant 0 : i32
    %c0_i32_1 = arith.constant 0 : i32
    %c0_i32_2 = arith.constant 0 : i32
    %c0_i32_3 = arith.constant 0 : i32
    return %c0_i32, %c0_i32_0, %c0_i32_1, %c0_i32_2 : i32, i32, i32, i32
  }
  func.func @transform_2(%arg0: i32) -> (i32, i32, i32, i32) {
    %c0_i32 = arith.constant 0 : i32
    %c0_i32_0 = arith.constant 0 : i32
    %c0_i32_1 = arith.constant 0 : i32
    %c0_i32_2 = arith.constant 0 : i32
    %c0_i32_3 = arith.constant 0 : i32
    return %c0_i32, %c0_i32_0, %c0_i32_1, %c0_i32_2 : i32, i32, i32, i32
  }
  func.func @transform_3(%arg0: i32) -> (i32, i32, i32) {
    %c0_i32 = arith.constant 0 : i32
    %c0_i32_0 = arith.constant 0 : i32
    %c0_i32_1 = arith.constant 0 : i32
    return %arg0, %c0_i32, %c0_i32_0 : i32, i32, i32
  }
}

</mosaic_0001>

<bundles_post_ra>
// kernel: tpu_custom_call.1
= control target key start
LH: loop header
LB: loop body
LE: loop exit
PB: predicated region body
PF: predicated region fallthrough
CT: control target
= control target key end

     0   :  { %v1227_v3 = vmov 0   ;;  %s1228_s18 = smov 17   ;;  %s1853_s0 = inlined_call_operand.vmem [shape: f32[1,8,256], index: 0, kind: input, shape index: {}]   ;;  %s1854_s1 = inlined_call_operand.vmem [shape: f32[9,4,8,1], index: 1, kind: input, shape index: {}]   ;;  %s1855_s2 = inlined_call_operand.vmem [shape: f32[9,4,8,1], index: 2, kind: input, shape index: {}]   ;;  %s1856_s3 = inlined_call_operand.hbm [shape: f32[1,8,256], index: 3, kind: output, shape index: {}]  }
   0x1   :  { %v1260_v0 = vld [vmem:[%s1853_s0] sm:$0xff]  ;;  %v1117_v1 = vld [vmem:[%s1854_s1 + $0x10] sm:$0xff]  ;;  %1197 = vset.pattern.permute.xlu2 %v1227_v3  ;;  %1196 = vset.pattern.permute.xlu1 %v1227_v3 }
   0x2   :  { %v69_v2 = vld [vmem:[%s1854_s1] sm:$0xff]  ;;  %60 = vrot.lane.b32.xlu0 %v1260_v0, %s1228_s18  ;;  %96 = vperm.xlu2 %1197, %v1117_v1  }
   0x3   :  { %72 = vperm.xlu1 %1196, %v69_v2   ;;  %1198 = vset.pattern.permute.xlu0 %v1227_v3 }
   0x4   :  { %8 = vsyncpa [#allocation3], 0  ;;  %v1273_v4 = vld [vmem:[%s1853_s0 + $0x8] sm:$0xff]  ;;  %v1118_v5 = vld [vmem:[%s1854_s1 + $0x18] sm:$0xff]  ;;  %s1229_s27 = smov 16   ;;  %s1230_s9 = smov 15   ;;  %v17_v33 = vlaneseq }
   0x5   :  { %v1116_v6 = vld [vmem:[%s1854_s1 + $0x8] sm:$0xff]  ;;  %v1119_v7 = vld [vmem:[%s1854_s1 + $0x20] sm:$0xff]  ;;  %v1122_v9 = vld [vmem:[%s1854_s1 + $0x38] sm:$0xff]  ;;  %s1231_s19 = smov 1   ;;  %s1232_s8 = smov 127  }
   0x6   :  { %v1120_v8 = vld [vmem:[%s1854_s1 + $0x28] sm:$0xff]  ;;  %v1121_v10 = vld [vmem:[%s1854_s1 + $0x30] sm:$0xff]  ;;  %v1123_v11 = vld [vmem:[%s1854_s1 + $0x40] sm:$0xff]  ;;  %s1233_s20 = smov 113   ;;  %s1234_s30 = smov 112   ;;  %v1389_v37 = vand.u32 127, %v17_v33 }
   0x7   :  { %v1126_v12 = vld [vmem:[%s1854_s1 + $0x58] sm:$0xff]  ;;  %v1125_v13 = vld [vmem:[%s1854_s1 + $0x50] sm:$0xff]  ;;  %v1124_v14 = vld [vmem:[%s1854_s1 + $0x48] sm:$0xff]  ;;  %s1235_s14 = smov 111   ;;  %s1107_s4 = sshll.u32 %s1856_s3, 4  ;;  %s1108_s4 = int_to_ptr.hbm [resolvable:$true] %s1107_s4 }
   0x8   :  { %v1127_v15 = vld [vmem:[%s1854_s1 + $0x60] sm:$0xff]  ;;  %v1130_v16 = vld [vmem:[%s1854_s1 + $0x78] sm:$0xff]  ;;  %v1129_v17 = vld [vmem:[%s1854_s1 + $0x70] sm:$0xff]  ;;  %v1395_v39 = vadd.s32 128, %v1389_v37  ;;  %v24_v41 = vand.u32 15, %v1389_v37  ;;  %vm44_vm0 = vcmp.ge.s32.totalorder %v1389_v37, 16 }
   0x9   :  { %v1128_v18 = vld [vmem:[%s1854_s1 + $0x68] sm:$0xff]  ;;  %v1133_v19 = vld [vmem:[%s1854_s1 + $0x90] sm:$0xff]  ;;  %v1131_v21 = vld [vmem:[%s1854_s1 + $0x80] sm:$0xff]  ;;  %vm64_vm2 = vcmp.lt.s32.totalorder %v1389_v37, 17  ;;  %vm120_vm5 = vcmp.lt.s32.totalorder %v1389_v37, 16  ;;  %vm179_vm7 = vcmp.lt.s32.totalorder %v1389_v37, 15 }
   0xa   :  { %62 = vrot.lane.b32.xlu0 %v1273_v4, %s1228_s18  ;;  %109 = vperm.xlu2 %1197, %v1118_v5   ;;  %v1132_v20 = vld [vmem:[%s1854_s1 + $0x88] sm:$0xff]  ;;  %v1134_v22 = vld [vmem:[%s1854_s1 + $0x98] sm:$0xff]  ;;  %v1137_v23 = vld [vmem:[%s1854_s1 + $0xb0] sm:$0xff]  ;;  %v31_v44 = vand.u32 15, %v1395_v39  ;;  %vm1407_vm1 = vcmp.ge.s32.totalorder %v24_v41, 1  ;;  %vm1503_vm6 = vcmp.le.s32.totalorder %v24_v41, 14 }
   0xb   :  { %83 = vperm.xlu1 %1196, %v1116_v6   ;;  %v1136_v24 = vld [vmem:[%s1854_s1 + $0xa8] sm:$0xff]  ;;  %v1135_v25 = vld [vmem:[%s1854_s1 + $0xa0] sm:$0xff]  ;;  %v1138_v26 = vld [vmem:[%s1854_s1 + $0xb8] sm:$0xff]  ;;  %vm238_vm10 = vcmp.lt.s32.totalorder %v1389_v37, 1  ;;  %vm347_vm11 = vcmp.lt.s32.totalorder %v1389_v37, 127  ;;  %vm1860_vm12 = vcmp.lt.s32.totalorder %v1395_v39, 240 }
   0xc   :  { %v1141_v28 = vld [vmem:[%s1854_s1 + $0xd0] sm:$0xff]  ;;  %v1140_v29 = vld [vmem:[%s1854_s1 + $0xc8] sm:$0xff]  ;;  %v1139_v30 = vld [vmem:[%s1854_s1 + $0xc0] sm:$0xff]  ;;  %vm1418_vm3 = vcmp.ge.s32.totalorder %v31_v44, 1  ;;  %vm1510_vm8 = vcmp.le.s32.totalorder %v31_v44, 14  ;;  %vm1857_vm13 = vcmp.lt.s32.totalorder %v1389_v37, 113 }
   0xd   :  { %v1142_v32 = vld [vmem:[%s1854_s1 + $0xd8] sm:$0xff]  ;;  %v1145_v35 = vld [vmem:[%s1854_s1 + $0xf0] sm:$0xff]  ;;  %v1144_v36 = vld [vmem:[%s1854_s1 + $0xe8] sm:$0xff]  ;;  %vm1858_vm15 = vcmp.lt.s32.totalorder %v1389_v37, 112 }
   0xe   :  { %v1143_v38 = vld [vmem:[%s1854_s1 + $0xe0] sm:$0xff]  ;;  %v1146_v45 = vld [vmem:[%s1854_s1 + $0xf8] sm:$0xff]  ;;  %vm1426_vm4 = vmand %vm44_vm0, %vm1407_vm1 }
   0xf   :  { %v1149_v56 = vld [vmem:[%s1854_s1 + $0x110] sm:$0xff]  ;;  %v1148_v57 = vld [vmem:[%s1854_s1 + $0x108] sm:$0xff]  ;;  %v1147_v62 = vld [vmem:[%s1854_s1 + $0x100] sm:$0xff] }
  0x10   :  { %vm1518_vm9 = vmand %vm44_vm0, %vm1503_vm6 }
  0x11   :  { %vm1608_vm14 = vmand %vm1860_vm12, %vm1418_vm3 }
  0x12   :  { %116 = vrot.lane.b32.xlu0 %v1260_v0, %s1229_s27  ;;  %129 = vperm.xlu2 %1197, %v1119_v7  }
  0x13   :  { %118 = vrot.lane.b32.xlu1 %v1273_v4, %s1229_s27 }
  0x1a   :  { %142 = vperm.xlu0 %1198, %v1120_v8   ;;  %168 = vperm.xlu2 %1197, %v1122_v9  }
  0x1b   :  { %155 = vperm.xlu1 %1196, %v1121_v10  }
  0x22   :  { %188 = vperm.xlu0 %1198, %v1123_v11   ;;  %177 = vrot.lane.b32.xlu2 %v1273_v4, %s1230_s9 }
  0x23   :  { %175 = vrot.lane.b32.xlu1 %v1260_v0, %s1230_s9 }
  0x2a   :  { %227 = vperm.xlu0 %1198, %v1126_v12   ;;  %214 = vperm.xlu2 %1197, %v1125_v13   ;;  %v1152_v13 = vld [vmem:[%s1855_s2 + $0x10] sm:$0xff] }
  0x2b   :  { %201 = vperm.xlu1 %1196, %v1124_v14   ;;  %v1151_v14 = vld [vmem:[%s1855_s2 + $0x8] sm:$0xff] }
  0x32   :  { %247 = vperm.xlu0 %1198, %v1127_v15   ;;  %236 = vrot.lane.b32.xlu2 %v1273_v4, %s1231_s19  ;;  %v1150_v15 = vld [vmem:[%s1854_s1 + $0x118] sm:$0xff] }
  0x33   :  { %234 = vrot.lane.b32.xlu1 %v1260_v0, %s1231_s19 }
  0x3a   :  { %286 = vperm.xlu0 %1198, %v1130_v16   ;;  %273 = vperm.xlu2 %1197, %v1129_v17  }
  0x3b   :  { %260 = vperm.xlu1 %1196, %v1128_v18  }
  0x42   :  { %323 = vperm.xlu0 %1198, %v1133_v19   ;;  %310 = vperm.xlu2 %1197, %v1132_v20   ;;  %v1156_v19 = vld [vmem:[%s1855_s2 + $0x30] sm:$0xff]  ;;  %v1155_v20 = vld [vmem:[%s1855_s2 + $0x28] sm:$0xff] }
  0x43   :  { %297 = vperm.xlu1 %1196, %v1131_v21   ;;  %v593_v21 = vld [vmem:[%s1855_s2] sm:$0xff] }
  0x4a   :  { %345 = vrot.lane.b32.xlu0 %v1273_v4, %s1232_s8  ;;  %343 = vrot.lane.b32.xlu2 %v1260_v0, %s1232_s8 }
  0x4b   :  { %336 = vperm.xlu1 %1196, %v1134_v22  }
  0x52   :  { %382 = vperm.xlu0 %1198, %v1137_v23   ;;  %369 = vperm.xlu2 %1197, %v1136_v24  }
  0x53   :  { %356 = vperm.xlu1 %1196, %v1135_v25   ;;  %v1160_v25 = vld [vmem:[%s1855_s2 + $0x50] sm:$0xff] }
  0x5a   :  { %404 = vrot.lane.b32.xlu0 %v1273_v4, %s1233_s20  ;;  %402 = vrot.lane.b32.xlu2 %v1260_v0, %s1233_s20 }
  0x5b   :  { %395 = vperm.xlu1 %1196, %v1138_v26   ;;  %v1159_v26 = vld [vmem:[%s1855_s2 + $0x48] sm:$0xff] }
  0x5c   :  { %v97_v27 = vpop.permute.xlu2 %96 }
  0x62   :  { %441 = vperm.xlu0 %1198, %v1141_v28   ;;  %428 = vperm.xlu2 %1197, %v1140_v29  }
  0x63   :  { %415 = vperm.xlu1 %1196, %v1139_v30  }
  0x64   :  { %v1372_v31 = vpop.permute.xlu2 %109 }
  0x6a   :  { %463 = vrot.lane.b32.xlu0 %v1273_v4, %s1234_s30  ;;  %461 = vrot.lane.b32.xlu2 %v1260_v0, %s1234_s30 }
  0x6b   :  { %454 = vperm.xlu1 %1196, %v1142_v32  }
  0x6c   :  { %v1381_v34 = vpop.permute.xlu2 %129 }
  0x72   :  { %500 = vperm.xlu0 %1198, %v1145_v35   ;;  %487 = vperm.xlu2 %1197, %v1144_v36  }
  0x73   :  { %474 = vperm.xlu1 %1196, %v1143_v38  }
  0x74   :  { %v61_v40 = vpop.permute.xlu0 %60  ;;  %v1398_v42 = vpop.permute.xlu2 %168 }
  0x75   :  { %v73_v43 = vpop.permute.xlu1 %72 }
  0x7a   :  { %522 = vrot.lane.b32.xlu0 %v1273_v4, %s1235_s14  ;;  %520 = vrot.lane.b32.xlu2 %v1260_v0, %s1235_s14 }
  0x7b   :  { %513 = vperm.xlu1 %1196, %v1146_v45  }
  0x7c   :  { %v63_v49 = vpop.permute.xlu0 %62  ;;  %v1438_v55 = vpop.permute.xlu2 %177 }
  0x7d   :  { %v65_v50 = vsel %vm64_vm2, %v61_v40, %v63_v49  ;;  %v66_v51 = vsel %vm64_vm2, %v63_v49, %v61_v40  ;;  %v84_v52 = vpop.permute.xlu1 %83 }
  0x7e   :  { %v67_v53 = vsel %vm1426_vm4, %v66_v51, 0.0  ;;  %v68_v54 = vsel %vm1418_vm3, %v65_v50, 0.0  ;;  %v1163_v50 = vld [vmem:[%s1855_s2 + $0x68] sm:$0xff] }
  0x7f   :  { %v90_v58 = vrot.slane %v67_v53, 4  ;;  %v91_v59 = vrot.slane %v68_v54, 4  ;;  %v77_v60 = vrot.slane %v67_v53, 2  ;;  %v78_v61 = vrot.slane %v68_v54, 2 }
  0x80   :  { %v75_v63 = vmul.f32 %v73_v43, %v67_v53  ;;  %v76_v1 = vmul.f32 %v73_v43, %v68_v54  ;;  %v103_v28 = vrot.slane %v67_v53, 6  ;;  %v104_v29 = vrot.slane %v68_v54, 6 }
  0x81   :  { %v86_v2 = vmul.f32 %v84_v52, %v77_v60  ;;  %v87_v3 = vmul.f32 %v84_v52, %v78_v61  ;;  %v99_v7 = vmul.f32 %v97_v27, %v90_v58  ;;  %v100_v8 = vmul.f32 %v97_v27, %v91_v59  ;;  %v1153_v27 = vld [vmem:[%s1855_s2 + $0x18] sm:$0xff] }
  0x82   :  { %559 = vperm.xlu0 %1198, %v1149_v56   ;;  %546 = vperm.xlu2 %1197, %v1148_v57   ;;  %v112_v40 = vmul.f32 %v1372_v31, %v103_v28  ;;  %v113_v43 = vmul.f32 %v1372_v31, %v104_v29  ;;  %v1154_v56 = vld [vmem:[%s1855_s2 + $0x20] sm:$0xff] }
  0x83   :  { %533 = vperm.xlu1 %1196, %v1147_v62   ;;  %v88_v5 = vadd.f32 %v86_v2, %v75_v63  ;;  %v89_v6 = vadd.f32 %v87_v3, %v76_v1 }
  0x84   :  { %v117_v9 = vpop.permute.xlu0 %116  ;;  %v1458_v16 = vpop.permute.xlu2 %214 }
  0x85   :  { %v119_v10 = vpop.permute.xlu1 %118  ;;  %v101_v11 = vadd.f32 %v99_v7, %v88_v5  ;;  %v102_v12 = vadd.f32 %v100_v8, %v89_v6 }
  0x86   :  { %v122_v30 = vsel %vm120_vm5, %v119_v10, %v117_v9  ;;  %v121_v32 = vsel %vm120_vm5, %v117_v9, %v119_v10 }
  0x87   :  { %v123_v35 = vsel %vm44_vm0, %v122_v30, 0.0  ;;  %v133_v45 = vmul.f32 %v1381_v34, %v121_v32  ;;  %v137_v49 = vrot.slane %v121_v32, 2  ;;  %v114_v52 = vadd.f32 %v112_v40, %v101_v11  ;;  %v1157_v11 = vld [vmem:[%s1855_s2 + $0x38] sm:$0xff] }
  0x88   :  { %v132_v51 = vmul.f32 %v1381_v34, %v123_v35  ;;  %v115_v53 = vadd.f32 %v113_v43, %v102_v12  ;;  %v136_v54 = vrot.slane %v123_v35, 2  ;;  %v149_v31 = vrot.slane %v123_v35, 4 }
  0x89   :  { %v150_v59 = vrot.slane %v121_v32, 4  ;;  %v162_v8 = vrot.slane %v123_v35, 6  ;;  %v163_v9 = vrot.slane %v121_v32, 6 }
  0x8a   :  { %620 = vperm.xlu0 %1198, %v1152_v13   ;;  %607 = vperm.xlu2 %1197, %v1151_v14   ;;  %v134_v34 = vadd.f32 %v132_v51, %v114_v52  ;;  %v135_v61 = vadd.f32 %v133_v45, %v115_v53 }
  0x8b   :  { %572 = vperm.xlu1 %1196, %v1150_v15  }
  0x8c   :  { %v143_v17 = vpop.permute.xlu0 %142  ;;  %v1469_v22 = vpop.permute.xlu2 %236 }
  0x8d   :  { %v156_v18 = vpop.permute.xlu1 %155  ;;  %v145_v57 = vmul.f32 %v143_v17, %v136_v54  ;;  %v146_v58 = vmul.f32 %v143_v17, %v137_v49  ;;  %v171_v17 = vmul.f32 %v1398_v42, %v162_v8 }
  0x8e   :  { %v158_v63 = vmul.f32 %v156_v18, %v149_v31  ;;  %v159_v1 = vmul.f32 %v156_v18, %v150_v59 }
  0x8f   :  { %v147_v5 = vadd.f32 %v145_v57, %v134_v34  ;;  %v148_v41 = vadd.f32 %v146_v58, %v135_v61 }
  0x91   :  { %v160_v14 = vadd.f32 %v158_v63, %v147_v5  ;;  %v161_v15 = vadd.f32 %v159_v1, %v148_v41 }
  0x92   :  { %678 = vperm.xlu0 %1198, %v1156_v19   ;;  %665 = vperm.xlu2 %1197, %v1155_v20  }
  0x93   :  { %596 = vperm.xlu1 %1196, %v593_v21  }
  0x94   :  { %v189_v23 = vpop.permute.xlu0 %188  ;;  %v1489_v36 = vpop.permute.xlu2 %273 }
  0x95   :  { %v176_v24 = vpop.permute.xlu1 %175 }
  0x96   :  { %v180_v7 = vsel %vm179_vm7, %v176_v24, %v1438_v55  ;;  %v181_v44 = vsel %vm179_vm7, %v1438_v55, %v176_v24  ;;  %v172_v55 = vmul.f32 %v1398_v42, %v163_v9  ;;  %v1158_v42 = vld [vmem:[%s1855_s2 + $0x40] sm:$0xff] }
  0x97   :  { %v182_v12 = vsel %vm1518_vm9, %v181_v44, 0.0  ;;  %v183_v13 = vsel %vm1510_vm8, %v180_v7, 0.0 }
  0x98   :  { %v191_v18 = vmul.f32 %v189_v23, %v182_v12  ;;  %v192_v19 = vmul.f32 %v189_v23, %v183_v13  ;;  %v195_v20 = vrot.slane %v182_v12, 2  ;;  %v196_v21 = vrot.slane %v183_v13, 2 }
  0x99   :  { %v208_v30 = vrot.slane %v182_v12, 4  ;;  %v209_v32 = vrot.slane %v183_v13, 4  ;;  %v221_v53 = vrot.slane %v182_v12, 6  ;;  %v222_v54 = vrot.slane %v183_v13, 6 }
  0x9a   :  { %736 = vperm.xlu0 %1198, %v1160_v25   ;;  %723 = vperm.xlu2 %1197, %v1159_v26   ;;  %v173_v26 = vadd.f32 %v171_v17, %v160_v14 }
  0x9b   :  { %633 = vperm.xlu1 %1196, %v1153_v27   ;;  %v174_v27 = vadd.f32 %v172_v55, %v161_v15  ;;  %v218_v51 = vmul.f32 %v1458_v16, %v209_v32 }
  0x9c   :  { %v1485_v33 = vpop.permute.xlu0 %227  ;;  %v1528_v10 = vpop.permute.xlu2 %310  ;;  %v193_v35 = vadd.f32 %v191_v18, %v173_v26  ;;  %v1162_v18 = vld [vmem:[%s1855_s2 + $0x60] sm:$0xff] }
  0x9d   :  { %v202_v38 = vpop.permute.xlu1 %201  ;;  %v194_v40 = vadd.f32 %v192_v19, %v174_v27  ;;  %v231_v34 = vmul.f32 %v1485_v33, %v222_v54  ;;  %v331_v54 = vrot.slane %v1273_v4, 6 }
  0x9e   :  { %v204_v28 = vmul.f32 %v202_v38, %v195_v20  ;;  %v205_v29 = vmul.f32 %v202_v38, %v196_v21 }
  0xa0   :  { %v206_v23 = vadd.f32 %v204_v28, %v193_v35  ;;  %v207_v45 = vadd.f32 %v205_v29, %v194_v40  ;;  %v305_v40 = vrot.slane %v1273_v4, 2 }
  0xa2   :  { %781 = vperm.xlu2 %1197, %v1163_v50   ;;  %v217_v50 = vmul.f32 %v1458_v16, %v208_v30  ;;  %v220_v59 = vadd.f32 %v218_v51, %v207_v45 }
  0xa3   :  { %652 = vperm.xlu1 %1196, %v1154_v56  }
  0xa4   :  { %v248_v62 = vpop.permute.xlu0 %247  ;;  %v1543_v43 = vpop.permute.xlu2 %343  ;;  %v219_v31 = vadd.f32 %v217_v50, %v206_v23  ;;  %v233_v41 = vadd.f32 %v231_v34, %v220_v59  ;;  %v317_v50 = vrot.slane %v1260_v0, 4 }
  0xa5   :  { %v235_v3 = vpop.permute.xlu1 %234 }
  0xa6   :  { %v239_v49 = vsel %vm238_vm10, %v235_v3, %v1469_v22  ;;  %v240_v38 = vsel %vm238_vm10, %v1469_v22, %v235_v3  ;;  %v230_v22 = vmul.f32 %v1485_v33, %v221_v53  ;;  %v1161_v3 = vld [vmem:[%s1855_s2 + $0x58] sm:$0xff]  ;;  %v314_v53 = vmul.f32 %v1528_v10, %v305_v40 }
  0xa7   :  { %v241_v56 = vsel %vm1407_vm1, %v240_v38, 0.0  ;;  %v242_v57 = vsel %vm1418_vm3, %v239_v49, 0.0  ;;  %v1165_v38 = vld [vmem:[%s1855_s2 + $0x78] sm:$0xff] }
  0xa8   :  { %v250_v61 = vmul.f32 %v248_v62, %v241_v56  ;;  %v251_v63 = vmul.f32 %v248_v62, %v242_v57  ;;  %v254_v16 = vrot.slane %v241_v56, 2  ;;  %v255_v1 = vrot.slane %v242_v57, 2 }
  0xa9   :  { %v232_v5 = vadd.f32 %v230_v22, %v219_v31  ;;  %v267_v9 = vrot.slane %v241_v56, 4  ;;  %v280_v19 = vrot.slane %v241_v56, 6  ;;  %v281_v20 = vrot.slane %v242_v57, 6 }
  0xaa   :  { %v253_v13 = vadd.f32 %v251_v63, %v233_v41  ;;  %v330_v56 = vrot.slane %v1260_v0, 6 }
  0xab   :  { %691 = vperm.xlu1 %1196, %v1157_v11   ;;  %v268_v11 = vrot.slane %v242_v57, 4  ;;  %v252_v12 = vadd.f32 %v250_v61, %v232_v5  ;;  %v276_v17 = vmul.f32 %v1489_v36, %v267_v9 }
  0xac   :  { %v287_v24 = vpop.permute.xlu0 %286  ;;  %v1564_v8 = vpop.permute.xlu2 %369 }
  0xad   :  { %v261_v25 = vpop.permute.xlu1 %260  ;;  %v277_v55 = vmul.f32 %v1489_v36, %v268_v11  ;;  %v289_v26 = vmul.f32 %v287_v24, %v280_v19  ;;  %v290_v27 = vmul.f32 %v287_v24, %v281_v20  ;;  %v304_v36 = vrot.slane %v1260_v0, 2 }
  0xae   :  { %v263_v7 = vmul.f32 %v261_v25, %v254_v16  ;;  %v264_v44 = vmul.f32 %v261_v25, %v255_v1  ;;  %v318_v24 = vrot.slane %v1273_v4, 4 }
  0xaf   :  { %v313_v51 = vmul.f32 %v1528_v10, %v304_v36 }
  0xb0   :  { %v265_v62 = vadd.f32 %v263_v7, %v252_v12  ;;  %v266_v15 = vadd.f32 %v264_v44, %v253_v13 }
  0xb2   :  { %v278_v21 = vadd.f32 %v276_v17, %v265_v62  ;;  %v279_v25 = vadd.f32 %v277_v55, %v266_v15 }
  0xb3   :  { %710 = vperm.xlu1 %1196, %v1158_v42  }
  0xb4   :  { %v1553_v52 = vpop.permute.xlu0 %323  ;;  %v403_v32 = vpop.permute.xlu2 %402  ;;  %v291_v42 = vadd.f32 %v289_v26, %v278_v21  ;;  %v292_v23 = vadd.f32 %v290_v27, %v279_v25 }
  0xb5   :  { %v298_v58 = vpop.permute.xlu1 %297  ;;  %v326_v61 = vmul.f32 %v1553_v52, %v317_v50  ;;  %v327_v10 = vmul.f32 %v1553_v52, %v318_v24 }
  0xb6   :  { %v300_v28 = vmul.f32 %v298_v58, %v1260_v0  ;;  %v301_v29 = vmul.f32 %v298_v58, %v1273_v4 }
  0xb8   :  { %v302_v45 = vadd.f32 %v300_v28, %v291_v42  ;;  %v303_v49 = vadd.f32 %v301_v29, %v292_v23 }
  0xba   :  { %v315_v57 = vadd.f32 %v313_v51, %v302_v45  ;;  %v316_v58 = vadd.f32 %v314_v53, %v303_v49 }
  0xbb   :  { %749 = vperm.xlu1 %1196, %v1161_v3  }
  0xbc   :  { %v346_v33 = vpop.permute.xlu0 %345  ;;  %v429_v1 = vpop.permute.xlu2 %428  ;;  %v328_v3 = vadd.f32 %v326_v61, %v315_v57  ;;  %v329_v5 = vadd.f32 %v327_v10, %v316_v58 }
  0xbd   :  { %v337_v14 = vpop.permute.xlu1 %336  ;;  %v348_v31 = vsel %vm347_vm11, %v1543_v43, %v346_v33  ;;  %v349_v59 = vsel %vm347_vm11, %v346_v33, %v1543_v43  ;;  %v1168_v43 = vld [vmem:[%s1855_s2 + $0x90] sm:$0xff] }
  0xbe   :  { %v339_v4 = vmul.f32 %v337_v14, %v330_v56  ;;  %v340_v63 = vmul.f32 %v337_v14, %v331_v54  ;;  %v350_v0 = vsel %vm1503_vm6, %v348_v31, 0.0  ;;  %v351_v16 = vsel %vm1510_vm8, %v349_v59, 0.0 }
  0xbf   :  { %v363_v44 = vrot.slane %v350_v0, 2  ;;  %v364_v9 = vrot.slane %v351_v16, 2  ;;  %v376_v62 = vrot.slane %v350_v0, 4  ;;  %v377_v15 = vrot.slane %v351_v16, 4 }
  0xc0   :  { %v341_v52 = vadd.f32 %v339_v4, %v328_v3  ;;  %v342_v11 = vadd.f32 %v340_v63, %v329_v5  ;;  %v390_v19 = vrot.slane %v351_v16, 6 }
  0xc1   :  { %v372_v17 = vmul.f32 %v1564_v8, %v363_v44  ;;  %v373_v55 = vmul.f32 %v1564_v8, %v364_v9 }
  0xc3   :  { %768 = vperm.xlu1 %1196, %v1162_v18   ;;  %v389_v18 = vrot.slane %v350_v0, 6 }
  0xc4   :  { %v383_v30 = vpop.permute.xlu0 %382  ;;  %v462_v28 = vpop.permute.xlu2 %461 }
  0xc5   :  { %v357_v35 = vpop.permute.xlu1 %356  ;;  %v385_v8 = vmul.f32 %v383_v30, %v376_v62  ;;  %v386_v29 = vmul.f32 %v383_v30, %v377_v15 }
  0xc6   :  { %v359_v41 = vmul.f32 %v357_v35, %v350_v0  ;;  %v360_v7 = vmul.f32 %v357_v35, %v351_v16 }
  0xc8   :  { %v361_v12 = vadd.f32 %v359_v41, %v341_v52  ;;  %v362_v13 = vadd.f32 %v360_v7, %v342_v11 }
  0xca   :  { %v374_v20 = vadd.f32 %v372_v17, %v361_v12  ;;  %v375_v21 = vadd.f32 %v373_v55, %v362_v13 }
  0xcb   :  { %807 = vperm.xlu1 %1196, %v1165_v38  }
  0xcc   :  { %v405_v22 = vpop.permute.xlu0 %404  ;;  %v387_v23 = vadd.f32 %v385_v8, %v374_v20  ;;  %v388_v45 = vadd.f32 %v386_v29, %v375_v21 }
  0xcd   :  { %v396_v34 = vpop.permute.xlu1 %395  ;;  %v407_v26 = vsel %vm1857_vm13, %v403_v32, %v405_v22  ;;  %v408_v27 = vsel %vm1857_vm13, %v405_v22, %v403_v32  ;;  %v488_v22 = vpop.permute.xlu2 %487  ;;  %vm1859_vm13 = vcmp.lt.s32.totalorder %v1389_v37, 111 }
  0xce   :  { %v398_v35 = vmul.f32 %v396_v34, %v389_v18  ;;  %v399_v36 = vmul.f32 %v396_v34, %v390_v19  ;;  %v409_v40 = vsel %vm1407_vm1, %v407_v26, 0.0  ;;  %v410_v42 = vsel %vm1608_vm14, %v408_v27, 0.0 }
  0xcf   :  { %v422_v51 = vrot.slane %v409_v40, 2  ;;  %v423_v53 = vrot.slane %v410_v42, 2  ;;  %v435_v57 = vrot.slane %v409_v40, 4  ;;  %v436_v58 = vrot.slane %v410_v42, 4 }
  0xd0   :  { %v400_v32 = vadd.f32 %v398_v35, %v387_v23  ;;  %v401_v54 = vadd.f32 %v399_v36, %v388_v45  ;;  %v448_v34 = vrot.slane %v409_v40, 6  ;;  %v449_v63 = vrot.slane %v410_v42, 6 }
  0xd1   :  { %v431_v31 = vmul.f32 %v429_v1, %v422_v51  ;;  %v432_v59 = vmul.f32 %v429_v1, %v423_v53 }
  0xd3   :  { %844 = vperm.xlu1 %1196, %v1168_v43  }
  0xd4   :  { %v442_v33 = vpop.permute.xlu0 %441 }
  0xd5   :  { %v416_v14 = vpop.permute.xlu1 %415  ;;  %v444_v3 = vmul.f32 %v442_v33, %v435_v57  ;;  %v445_v5 = vmul.f32 %v442_v33, %v436_v58  ;;  %v521_v55 = vpop.permute.xlu2 %520 }
  0xd6   :  { %v418_v49 = vmul.f32 %v416_v14, %v409_v40  ;;  %v419_v38 = vmul.f32 %v416_v14, %v410_v42 }
  0xd8   :  { %v420_v56 = vadd.f32 %v418_v49, %v400_v32  ;;  %v421_v30 = vadd.f32 %v419_v38, %v401_v54 }
  0xda   :  { %v433_v61 = vadd.f32 %v431_v31, %v420_v56  ;;  %v434_v10 = vadd.f32 %v432_v59, %v421_v30 }
  0xdc   :  { %v464_v24 = vpop.permute.xlu0 %463  ;;  %v446_v44 = vadd.f32 %v444_v3, %v433_v61  ;;  %v447_v9 = vadd.f32 %v445_v5, %v434_v10 }
  0xdd   :  { %v455_v50 = vpop.permute.xlu1 %454  ;;  %v467_v4 = vsel %vm1858_vm15, %v464_v24, %v462_v28  ;;  %v466_v43 = vsel %vm1858_vm15, %v462_v28, %v464_v24  ;;  %vm1632_vm15 = vmand %vm1860_vm12, %vm1510_vm8  ;;  %v547_v31 = vpop.permute.xlu2 %546 }
  0xde   :  { %v457_v41 = vmul.f32 %v455_v50, %v448_v34  ;;  %v458_v7 = vmul.f32 %v455_v50, %v449_v63  ;;  %v469_v1 = vsel %vm1860_vm12, %v467_v4, 0.0  ;;  %v481_v12 = vrot.slane %v466_v43, 2 }
  0xdf   :  { %v482_v13 = vrot.slane %v469_v1, 2  ;;  %v494_v18 = vrot.slane %v466_v43, 4  ;;  %v495_v19 = vrot.slane %v469_v1, 4  ;;  %v507_v36 = vrot.slane %v466_v43, 6 }
  0xe0   :  { %v459_v14 = vadd.f32 %v457_v41, %v446_v44  ;;  %v460_v62 = vadd.f32 %v458_v7, %v447_v9  ;;  %v490_v21 = vmul.f32 %v488_v22, %v481_v12  ;;  %v508_v40 = vrot.slane %v469_v1, 6 }
  0xe1   :  { %v491_v26 = vmul.f32 %v488_v22, %v482_v13 }
  0xe4   :  { %v501_v0 = vpop.permute.xlu0 %500 }
  0xe5   :  { %v475_v16 = vpop.permute.xlu1 %474  ;;  %v503_v45 = vmul.f32 %v501_v0, %v494_v18  ;;  %v504_v49 = vmul.f32 %v501_v0, %v495_v19  ;;  %v1166_v18 = vld [vmem:[%s1855_s2 + $0x80] sm:$0xff]  ;;  %v1180_v19 = vld [vmem:[%s1855_s2 + $0xf0] sm:$0xff] }
  0xe6   :  { %v477_v52 = vmul.f32 %v475_v16, %v466_v43  ;;  %v478_v11 = vmul.f32 %v475_v16, %v469_v1 }
  0xe8   :  { %v479_v15 = vadd.f32 %v477_v52, %v459_v14  ;;  %v480_v33 = vadd.f32 %v478_v11, %v460_v62 }
  0xea   :  { %v492_v29 = vadd.f32 %v490_v21, %v479_v15  ;;  %v493_v35 = vadd.f32 %v491_v26, %v480_v33  ;;  %v1172_v33 = vld [vmem:[%s1855_s2 + $0xb0] sm:$0xff]  ;;  %v1169_v21 = vld [vmem:[%s1855_s2 + $0x98] sm:$0xff]  ;;  %v1170_v26 = vld [vmem:[%s1855_s2 + $0xa0] sm:$0xff] }
  0xec   :  { %v523_v17 = vpop.permute.xlu0 %522  ;;  %v505_v53 = vadd.f32 %v503_v45, %v492_v29  ;;  %v506_v32 = vadd.f32 %v504_v49, %v493_v35  ;;  %v608_v29 = vpop.permute.xlu2 %607  ;;  %v1173_v35 = vld [vmem:[%s1855_s2 + $0xb8] sm:$0xff] }
  0xed   :  { %v514_v20 = vpop.permute.xlu1 %513  ;;  %v525_v28 = vsel %vm1859_vm13, %v521_v55, %v523_v17  ;;  %v526_v8 = vsel %vm1859_vm13, %v523_v17, %v521_v55  ;;  %v1176_v17 = vld [vmem:[%s1855_s2 + $0xd0] sm:$0xff]  ;;  %v1177_v45 = vld [vmem:[%s1855_s2 + $0xd8] sm:$0xff] }
  0xee   :  { %v527_v42 = vsel %vm1503_vm6, %v525_v28, 0.0  ;;  %v528_v23 = vsel %vm1632_vm15, %v526_v8, 0.0  ;;  %v516_v38 = vmul.f32 %v514_v20, %v507_v36  ;;  %v517_v24 = vmul.f32 %v514_v20, %v508_v40  ;;  %v1164_v55 = vld [vmem:[%s1855_s2 + $0x70] sm:$0xff]  ;;  %v1167_v20 = vld [vmem:[%s1855_s2 + $0x88] sm:$0xff]  ;;  %v1174_v40 = vld [vmem:[%s1855_s2 + $0xc0] sm:$0xff] }
  0xef   :  { %v540_v50 = vrot.slane %v527_v42, 2  ;;  %v541_v51 = vrot.slane %v528_v23, 2  ;;  %v553_v59 = vrot.slane %v527_v42, 4  ;;  %v554_v22 = vrot.slane %v528_v23, 4  ;;  %v1184_v28 = vld [vmem:[%s1855_s2 + $0x110] sm:$0xff]  ;;  %v1171_v8 = vld [vmem:[%s1855_s2 + $0xa8] sm:$0xff] }
  0xf0   :  { %v518_v56 = vadd.f32 %v516_v38, %v505_v53  ;;  %v519_v30 = vadd.f32 %v517_v24, %v506_v32  ;;  %v566_v41 = vrot.slane %v527_v42, 6  ;;  %v567_v7 = vrot.slane %v528_v23, 6  ;;  %v1178_v24 = vld [vmem:[%s1855_s2 + $0xe0] sm:$0xff]  ;;  %v1179_v53 = vld [vmem:[%s1855_s2 + $0xe8] sm:$0xff] }
  0xf1   :  { %v549_v10 = vmul.f32 %v547_v31, %v540_v50  ;;  %v550_v4 = vmul.f32 %v547_v31, %v541_v51 }
  0xf4   :  { %v560_v63 = vpop.permute.xlu0 %559 }
  0xf5   :  { %v534_v54 = vpop.permute.xlu1 %533  ;;  %v562_v3 = vmul.f32 %v560_v63, %v553_v59  ;;  %v563_v5 = vmul.f32 %v560_v63, %v554_v22  ;;  %v1183_v59 = vld [vmem:[%s1855_s2 + $0x108] sm:$0xff] }
  0xf6   :  { %v536_v57 = vmul.f32 %v534_v54, %v527_v42  ;;  %v537_v58 = vmul.f32 %v534_v54, %v528_v23  ;;  %v1710_v42 = vpop.permute.xlu2 %665  ;;  %v1175_v23 = vld [vmem:[%s1855_s2 + $0xc8] sm:$0xff]  ;;  %v1181_v54 = vld [vmem:[%s1855_s2 + $0xf8] sm:$0xff] }
  0xf8   :  { %v538_v34 = vadd.f32 %v536_v57, %v518_v56  ;;  %v539_v61 = vadd.f32 %v537_v58, %v519_v30  ;;  %v1182_v57 = vld [vmem:[%s1855_s2 + $0x100] sm:$0xff] }
  0xfa   :  { %v551_v0 = vadd.f32 %v549_v10, %v538_v34  ;;  %v552_v16 = vadd.f32 %v550_v4, %v539_v61  ;;  %v1185_v34 = vld [vmem:[%s1855_s2 + $0x118] sm:$0xff]  ;;  %s1236_s2 = smov [#allocation2]  }
  0xfc   :  { %v564_v1 = vadd.f32 %v562_v3, %v551_v0  ;;  %v565_v44 = vadd.f32 %v563_v5, %v552_v16  ;;  %v621_v32 = vpop.permute.xlu0 %620 }
  0xfd   :  { %v573_v43 = vpop.permute.xlu1 %572 }
  0xfe   :  { %v575_v9 = vmul.f32 %v573_v43, %v566_v41  ;;  %v576_v52 = vmul.f32 %v573_v43, %v567_v7  ;;  %v1720_v38 = vpop.permute.xlu2 %723 }
 0x100   :  { %v577_v11 = vadd.f32 %v575_v9, %v564_v1  ;;  %v578_v12 = vadd.f32 %v576_v52, %v565_v44 }
 0x102   :  { %vm579_vm13 = vcmp.gt.f32.partialorder %v577_v11, 0.0  ;;  %vm580_vm12 = vcmp.gt.f32.partialorder %v578_v12, 0.0  ;;  %v581_v13 = vmul.f32 0.01, %v577_v11  ;;  %v582_v14 = vmul.f32 0.01, %v578_v12 }
 0x104   :  { %v1644_v62 = vsel %vm579_vm13, %v577_v11, %v581_v13  ;;  %v1646_v15 = vsel %vm580_vm12, %v578_v12, %v582_v14  ;;  %v679_v58 = vpop.permute.xlu0 %678 }
 0x105   :  { %866 = vrot.lane.b32.xlu1 %v1646_v15, %s1232_s8  ;;  %587 = vrot.lane.b32.xlu0 %v1646_v15, %s1228_s18  ;;  %v597_v36 = vpop.permute.xlu1 %596 }
 0x106   :  { %585 = vrot.lane.b32.xlu2 %v1644_v62, %s1228_s18  ;;  %v1727_v51 = vpop.permute.xlu2 %781 }
 0x10c   :  { %v1750_v61 = vpop.permute.xlu0 %736 }
 0x10d   :  { %902 = vperm.xlu1 %1196, %v1172_v33   ;;  %642 = vrot.lane.b32.xlu0 %v1646_v15, %s1229_s27  ;;  %v634_v49 = vpop.permute.xlu1 %633 }
 0x10e   :  { %640 = vrot.lane.b32.xlu2 %v1644_v62, %s1229_s27 }
 0x115   :  { %924 = vrot.lane.b32.xlu1 %v1646_v15, %s1233_s20  ;;  %700 = vrot.lane.b32.xlu0 %v1646_v15, %s1230_s9  ;;  %v653_v50 = vpop.permute.xlu1 %652 }
 0x116   :  { %698 = vrot.lane.b32.xlu2 %v1644_v62, %s1230_s9 }
 0x11d   :  { %960 = vperm.xlu1 %1196, %v1176_v17   ;;  %758 = vrot.lane.b32.xlu0 %v1646_v15, %s1231_s19  ;;  %v1735_v56 = vpop.permute.xlu1 %691 }
 0x11e   :  { %756 = vrot.lane.b32.xlu2 %v1644_v62, %s1231_s19 }
 0x125   :  { %982 = vrot.lane.b32.xlu1 %v1646_v15, %s1234_s30  ;;  %794 = vperm.xlu0 %1198, %v1164_v55   ;;  %v1742_v31 = vpop.permute.xlu1 %710 }
 0x126   :  { %818 = vperm.xlu2 %1197, %v1166_v18  }
 0x12d   :  { %1018 = vperm.xlu1 %1196, %v1180_v19   ;;  %831 = vperm.xlu0 %1198, %v1167_v20   ;;  %v1752_v10 = vpop.permute.xlu1 %749 }
 0x12e   :  { %857 = vperm.xlu2 %1197, %v1169_v21  }
 0x135   :  { %1040 = vrot.lane.b32.xlu1 %v1646_v15, %s1235_s14  ;;  %864 = vrot.lane.b32.xlu0 %v1644_v62, %s1232_s8  ;;  %v1762_v14 = vpop.permute.xlu1 %768 }
 0x136   :  { %876 = vperm.xlu2 %1197, %v1170_v26  }
 0x13d   :  { %1076 = vperm.xlu1 %1196, %v1184_v28   ;;  %889 = vperm.xlu0 %1198, %v1171_v8  }
 0x13e   :  { %915 = vperm.xlu2 %1197, %v1173_v35  }
 0x145   :  { %922 = vrot.lane.b32.xlu0 %v1644_v62, %s1233_s20 }
 0x146   :  { %934 = vperm.xlu2 %1197, %v1174_v40  }
 0x14d   :  { %947 = vperm.xlu0 %1198, %v1175_v23  }
 0x14e   :  { %973 = vperm.xlu2 %1197, %v1177_v45  }
 0x155   :  { %980 = vrot.lane.b32.xlu0 %v1644_v62, %s1234_s30 }
 0x156   :  { %992 = vperm.xlu2 %1197, %v1178_v24  }
 0x15d   :  { %1005 = vperm.xlu0 %1198, %v1179_v53  }
 0x15e   :  { %1031 = vperm.xlu2 %1197, %v1181_v54  }
 0x160   :  { %v586_v30 = vpop.permute.xlu2 %585 }
 0x165   :  { %1038 = vrot.lane.b32.xlu0 %v1644_v62, %s1235_s14  ;;  %s1105_s14 = sshll.u32 %s1236_s2, 4  ;;  %s1106_s14 = int_to_ptr.vmem [resolvable:$true] %s1105_s14 }
 0x166   :  { %1050 = vperm.xlu2 %1197, %v1182_v57  }
 0x168   :  { %v641_v22 = vpop.permute.xlu2 %640 }
 0x16d   :  { %1063 = vperm.xlu0 %1198, %v1183_v59  }
 0x16e   :  { %1089 = vperm.xlu2 %1197, %v1185_v34  }
 0x170   :  { %v699_v4 = vpop.permute.xlu2 %698 }
 0x177   :  { %v588_v63 = vpop.permute.xlu0 %587 }
 0x178   :  { %v589_v0 = vsel %vm64_vm2, %v586_v30, %v588_v63  ;;  %v590_v16 = vsel %vm64_vm2, %v588_v63, %v586_v30  ;;  %v757_v20 = vpop.permute.xlu2 %756 }
 0x179   :  { %v591_v3 = vsel %vm1426_vm4, %v590_v16, 0.0  ;;  %v592_v5 = vsel %vm1418_vm3, %v589_v0, 0.0  ;;  %vm1881_vm4 = vcmp.lt.s32.totalorder %v1395_v39, 240 }
 0x17a   :  { %v601_v41 = vrot.slane %v591_v3, 2  ;;  %v602_v7 = vrot.slane %v592_v5, 2  ;;  %v614_v43 = vrot.slane %v591_v3, 4  ;;  %v615_v1 = vrot.slane %v592_v5, 4 }
 0x17b   :  { %v627_v44 = vrot.slane %v591_v3, 6  ;;  %v628_v9 = vrot.slane %v592_v5, 6  ;;  %v599_v52 = vmul.f32 %v597_v36, %v591_v3  ;;  %v600_v11 = vmul.f32 %v597_v36, %v592_v5 }
 0x17c   :  { %v610_v12 = vmul.f32 %v608_v29, %v601_v41  ;;  %v611_v13 = vmul.f32 %v608_v29, %v602_v7  ;;  %v623_v55 = vmul.f32 %v621_v32, %v614_v43  ;;  %v624_v48 = vmul.f32 %v621_v32, %v615_v1 }
 0x17d   :  { %v636_v18 = vmul.f32 %v634_v49, %v627_v44  ;;  %v637_v19 = vmul.f32 %v634_v49, %v628_v9  ;;  %v808_v9 = vpop.permute.xlu1 %807 }
 0x17e   :  { %v612_v33 = vadd.f32 %v610_v12, %v599_v52  ;;  %v613_v17 = vadd.f32 %v611_v13, %v600_v11 }
 0x17f   :  { %v643_v21 = vpop.permute.xlu0 %642 }
 0x180   :  { %v625_v26 = vadd.f32 %v623_v55, %v612_v33  ;;  %v626_v28 = vadd.f32 %v624_v48, %v613_v17  ;;  %v644_v8 = vsel %vm120_vm5, %v641_v22, %v643_v21  ;;  %v645_v35 = vsel %vm120_vm5, %v643_v21, %v641_v22 }
 0x181   :  { %v646_v29 = vsel %vm44_vm0, %v645_v35, 0.0  ;;  %v656_v36 = vmul.f32 %v653_v50, %v644_v8  ;;  %v660_v40 = vrot.slane %v644_v8, 2  ;;  %v673_v23 = vrot.slane %v644_v8, 4 }
 0x182   :  { %v638_v45 = vadd.f32 %v636_v18, %v625_v26  ;;  %v639_v24 = vadd.f32 %v637_v19, %v626_v28  ;;  %v655_v53 = vmul.f32 %v653_v50, %v646_v29  ;;  %v659_v49 = vrot.slane %v646_v29, 2 }
 0x183   :  { %v669_v32 = vmul.f32 %v1710_v42, %v660_v40  ;;  %v672_v54 = vrot.slane %v646_v29, 4  ;;  %v685_v30 = vrot.slane %v646_v29, 6  ;;  %v686_v63 = vrot.slane %v644_v8, 6 }
 0x184   :  { %v657_v57 = vadd.f32 %v655_v53, %v638_v45  ;;  %v658_v59 = vadd.f32 %v656_v36, %v639_v24  ;;  %v668_v34 = vmul.f32 %v1710_v42, %v659_v49  ;;  %v682_v3 = vmul.f32 %v679_v58, %v673_v23  ;;  %v1778_v42 = vpop.permute.xlu2 %818 }
 0x185   :  { %v681_v16 = vmul.f32 %v679_v58, %v672_v54  ;;  %v694_v5 = vmul.f32 %v1735_v56, %v685_v30  ;;  %v695_v41 = vmul.f32 %v1735_v56, %v686_v63  ;;  %v845_v30 = vpop.permute.xlu1 %844  ;;  %vm1877_vm0 = vcmp.lt.s32.totalorder %v1389_v37, 113 }
 0x186   :  { %v670_v22 = vadd.f32 %v668_v34, %v657_v57  ;;  %v671_v0 = vadd.f32 %v669_v32, %v658_v59  ;;  %vm1878_vm2 = vmmov %vm1877_vm0  ;;  %vm1882_vm5 = vcmp.lt.s32.totalorder %v1389_v37, 111 }
 0x187   :  { %v701_v7 = vpop.permute.xlu0 %700 }
 0x188   :  { %v683_v50 = vadd.f32 %v681_v16, %v670_v22  ;;  %v684_v43 = vadd.f32 %v682_v3, %v671_v0  ;;  %v702_v1 = vsel %vm179_vm7, %v699_v4, %v701_v7  ;;  %v703_v44 = vsel %vm179_vm7, %v701_v7, %v699_v4  ;;  %vm1883_vm7 = vmmov %vm1882_vm5 }
 0x189   :  { %v704_v52 = vsel %vm1518_vm9, %v703_v44, 0.0  ;;  %v705_v58 = vsel %vm1510_vm8, %v702_v1, 0.0 }
 0x18a   :  { %v697_v11 = vadd.f32 %v695_v41, %v684_v43  ;;  %v696_v56 = vadd.f32 %v694_v5, %v683_v50  ;;  %v713_v12 = vmul.f32 %v1742_v31, %v704_v52  ;;  %v714_v13 = vmul.f32 %v1742_v31, %v705_v58 }
 0x18b   :  { %v717_v33 = vrot.slane %v704_v52, 2  ;;  %v718_v17 = vrot.slane %v705_v58, 2  ;;  %v730_v55 = vrot.slane %v704_v52, 4  ;;  %v731_v48 = vrot.slane %v705_v58, 4 }
 0x18c   :  { %v715_v4 = vadd.f32 %v713_v12, %v696_v56  ;;  %v716_v18 = vadd.f32 %v714_v13, %v697_v11  ;;  %v743_v19 = vrot.slane %v704_v52, 6  ;;  %v744_v21 = vrot.slane %v705_v58, 6  ;;  %v858_v57 = vpop.permute.xlu2 %857 }
 0x18d   :  { %v726_v6 = vmul.f32 %v1720_v38, %v717_v33  ;;  %v727_v26 = vmul.f32 %v1720_v38, %v718_v17  ;;  %v739_v35 = vmul.f32 %v1750_v61, %v730_v55  ;;  %v740_v29 = vmul.f32 %v1750_v61, %v731_v48  ;;  %v867_v5 = vpop.permute.xlu1 %866 }
 0x18e   :  { %v752_v31 = vmul.f32 %v1752_v10, %v743_v19  ;;  %v753_v40 = vmul.f32 %v1752_v10, %v744_v21  ;;  %v826_v48 = vrot.slane %v1646_v15, 2  ;;  %v822_v19 = vmul.f32 %v1778_v42, %v1646_v15 }
 0x18f   :  { %v728_v28 = vadd.f32 %v726_v6, %v715_v4  ;;  %v729_v8 = vadd.f32 %v727_v26, %v716_v18  ;;  %v759_v36 = vpop.permute.xlu0 %758  ;;  %v825_v4 = vrot.slane %v1644_v62, 2  ;;  %v821_v18 = vmul.f32 %v1778_v42, %v1644_v62 }
 0x190   :  { %v760_v23 = vsel %vm238_vm10, %v757_v20, %v759_v36  ;;  %v761_v45 = vsel %vm238_vm10, %v759_v36, %v757_v20 }
 0x191   :  { %v741_v24 = vadd.f32 %v739_v35, %v728_v28  ;;  %v742_v53 = vadd.f32 %v740_v29, %v729_v8  ;;  %v762_v38 = vsel %vm1407_vm1, %v761_v45, 0.0  ;;  %v763_v49 = vsel %vm1418_vm3, %v760_v23, 0.0 }
 0x192   :  { %v771_v61 = vmul.f32 %v1762_v14, %v762_v38  ;;  %v772_v32 = vmul.f32 %v1762_v14, %v763_v49  ;;  %v775_v54 = vrot.slane %v762_v38, 2  ;;  %v776_v10 = vrot.slane %v763_v49, 2 }
 0x193   :  { %v754_v59 = vadd.f32 %v752_v31, %v741_v24  ;;  %v755_v34 = vadd.f32 %v753_v40, %v742_v53  ;;  %v788_v50 = vrot.slane %v762_v38, 4  ;;  %v789_v14 = vrot.slane %v763_v49, 4 }
 0x194   :  { %v784_v20 = vmul.f32 %v1727_v51, %v775_v54  ;;  %v785_v63 = vmul.f32 %v1727_v51, %v776_v10  ;;  %v877_v41 = vpop.permute.xlu2 %876  ;;  %v801_v52 = vrot.slane %v762_v38, 6  ;;  %v802_v58 = vrot.slane %v763_v49, 6 }
 0x195   :  { %v773_v22 = vadd.f32 %v771_v61, %v754_v59  ;;  %v774_v0 = vadd.f32 %v772_v32, %v755_v34  ;;  %v903_v44 = vpop.permute.xlu1 %902  ;;  %v839_v29 = vrot.slane %v1646_v15, 4  ;;  %v852_v53 = vrot.slane %v1646_v15, 6 }
 0x196   :  { %v810_v51 = vmul.f32 %v808_v9, %v801_v52  ;;  %v811_v33 = vmul.f32 %v808_v9, %v802_v58  ;;  %v838_v9 = vrot.slane %v1644_v62, 4  ;;  %v851_v38 = vrot.slane %v1644_v62, 6 }
 0x197   :  { %v795_v16 = vpop.permute.xlu0 %794  ;;  %v786_v3 = vadd.f32 %v784_v20, %v773_v22  ;;  %v787_v47 = vadd.f32 %v785_v63, %v774_v0  ;;  %v848_v24 = vmul.f32 %v845_v30, %v839_v29  ;;  %v861_v59 = vmul.f32 %v858_v57, %v852_v53 }
 0x198   :  { %v797_v43 = vmul.f32 %v795_v16, %v788_v50  ;;  %v798_v1 = vmul.f32 %v795_v16, %v789_v14  ;;  %v847_v42 = vmul.f32 %v845_v30, %v838_v9  ;;  %v860_v10 = vmul.f32 %v858_v57, %v851_v38 }
 0x19a   :  { %v799_v11 = vadd.f32 %v797_v43, %v786_v3  ;;  %v800_v56 = vadd.f32 %v798_v1, %v787_v47 }
 0x19c   :  { %v916_v12 = vpop.permute.xlu2 %915  ;;  %v812_v17 = vadd.f32 %v810_v51, %v799_v11  ;;  %v813_v55 = vadd.f32 %v811_v33, %v800_v56 }
 0x19d   :  { %v925_v26 = vpop.permute.xlu1 %924 }
 0x19e   :  { %v823_v28 = vadd.f32 %v821_v18, %v812_v17  ;;  %v824_v8 = vadd.f32 %v822_v19, %v813_v55 }
 0x19f   :  { %v832_v7 = vpop.permute.xlu0 %831 }
 0x1a0   :  { %v834_v21 = vmul.f32 %v832_v7, %v825_v4  ;;  %v835_v6 = vmul.f32 %v832_v7, %v826_v48 }
 0x1a2   :  { %v836_v36 = vadd.f32 %v834_v21, %v823_v28  ;;  %v837_v31 = vadd.f32 %v835_v6, %v824_v8 }
 0x1a4   :  { %v935_v40 = vpop.permute.xlu2 %934  ;;  %v849_v32 = vadd.f32 %v847_v42, %v836_v36  ;;  %v850_v54 = vadd.f32 %v848_v24, %v837_v31 }
 0x1a5   :  { %v961_v30 = vpop.permute.xlu1 %960 }
 0x1a6   :  { %v862_v16 = vadd.f32 %v860_v10, %v849_v32  ;;  %v863_v15 = vadd.f32 %v861_v59, %v850_v54 }
 0x1a7   :  { %v865_v13 = vpop.permute.xlu0 %864 }
 0x1a8   :  { %v868_v23 = vsel %vm347_vm11, %v865_v13, %v867_v5  ;;  %v869_v45 = vsel %vm347_vm11, %v867_v5, %v865_v13 }
 0x1a9   :  { %v870_v49 = vsel %vm1503_vm6, %v868_v23, 0.0  ;;  %v871_v61 = vsel %vm1510_vm8, %v869_v45, 0.0 }
 0x1aa   :  { %v879_v34 = vmul.f32 %v877_v41, %v870_v49  ;;  %v880_v20 = vmul.f32 %v877_v41, %v871_v61  ;;  %v883_v63 = vrot.slane %v870_v49, 2  ;;  %v884_v22 = vrot.slane %v871_v61, 2 }
 0x1ab   :  { %v896_v47 = vrot.slane %v870_v49, 4  ;;  %v897_v5 = vrot.slane %v871_v61, 4  ;;  %v909_v1 = vrot.slane %v870_v49, 6  ;;  %v910_v52 = vrot.slane %v871_v61, 6 }
 0x1ac   :  { %v974_v7 = vpop.permute.xlu2 %973  ;;  %v881_v50 = vadd.f32 %v879_v34, %v862_v16  ;;  %v882_v2 = vadd.f32 %v880_v20, %v863_v15 }
 0x1ad   :  { %v905_v58 = vmul.f32 %v903_v44, %v896_v47  ;;  %v906_v11 = vmul.f32 %v903_v44, %v897_v5  ;;  %v918_v55 = vmul.f32 %v916_v12, %v909_v1  ;;  %v919_v48 = vmul.f32 %v916_v12, %v910_v52  ;;  %v983_v4 = vpop.permute.xlu1 %982 }
 0x1af   :  { %v890_v35 = vpop.permute.xlu0 %889 }
 0x1b0   :  { %v892_v3 = vmul.f32 %v890_v35, %v883_v63  ;;  %v893_v62 = vmul.f32 %v890_v35, %v884_v22 }
 0x1b2   :  { %v894_v14 = vadd.f32 %v892_v3, %v881_v50  ;;  %v895_v43 = vadd.f32 %v893_v62, %v882_v2 }
 0x1b4   :  { %v907_v33 = vadd.f32 %v905_v58, %v894_v14  ;;  %v908_v17 = vadd.f32 %v906_v11, %v895_v43 }
 0x1b5   :  { %v1019_v49 = vpop.permute.xlu1 %1018 }
 0x1b6   :  { %v920_v28 = vadd.f32 %v918_v55, %v907_v33  ;;  %v921_v8 = vadd.f32 %v919_v48, %v908_v17 }
 0x1b7   :  { %v923_v0 = vpop.permute.xlu0 %922 }
 0x1b8   :  { %v926_v57 = vsel %vm1877_vm0, %v923_v0, %v925_v26  ;;  %v927_v41 = vsel %vm1878_vm2, %v925_v26, %v923_v0  ;;  %v993_v26 = vpop.permute.xlu2 %992 }
 0x1b9   :  { %v928_v13 = vsel %vm1407_vm1, %v926_v57, 0.0  ;;  %v929_v51 = vsel %vm1608_vm14, %v927_v41, 0.0  ;;  %vm1879_vm1 = vcmp.lt.s32.totalorder %v1389_v37, 112 }
 0x1ba   :  { %v937_v18 = vmul.f32 %v935_v40, %v928_v13  ;;  %v938_v19 = vmul.f32 %v935_v40, %v929_v51  ;;  %v941_v21 = vrot.slane %v928_v13, 2  ;;  %v942_v6 = vrot.slane %v929_v51, 2  ;;  %vm1880_vm3 = vmmov %vm1879_vm1 }
 0x1bb   :  { %v954_v9 = vrot.slane %v928_v13, 4  ;;  %v955_v46 = vrot.slane %v929_v51, 4  ;;  %v967_v45 = vrot.slane %v928_v13, 6  ;;  %v968_v42 = vrot.slane %v929_v51, 6 }
 0x1bc   :  { %v939_v29 = vadd.f32 %v937_v18, %v920_v28  ;;  %v940_v36 = vadd.f32 %v938_v19, %v921_v8 }
 0x1bd   :  { %v963_v40 = vmul.f32 %v961_v30, %v954_v9  ;;  %v964_v24 = vmul.f32 %v961_v30, %v955_v46  ;;  %v976_v54 = vmul.f32 %v974_v7, %v967_v45  ;;  %v977_v10 = vmul.f32 %v974_v7, %v968_v42  ;;  %v1041_v14 = vpop.permute.xlu1 %1040 }
 0x1bf   :  { %v948_v56 = vpop.permute.xlu0 %947 }
 0x1c0   :  { %v950_v44 = vmul.f32 %v948_v56, %v941_v21  ;;  %v951_v35 = vmul.f32 %v948_v56, %v942_v6  ;;  %v1032_v59 = vpop.permute.xlu2 %1031 }
 0x1c2   :  { %v952_v31 = vadd.f32 %v950_v44, %v939_v29  ;;  %v953_v23 = vadd.f32 %v951_v35, %v940_v36 }
 0x1c4   :  { %v965_v61 = vadd.f32 %v963_v40, %v952_v31  ;;  %v966_v32 = vadd.f32 %v964_v24, %v953_v23 }
 0x1c5   :  { %v1077_v29 = vpop.permute.xlu1 %1076 }
 0x1c6   :  { %v978_v16 = vadd.f32 %v976_v54, %v965_v61  ;;  %v979_v15 = vadd.f32 %v977_v10, %v966_v32  ;;  %v1200_v61 = vld [vmem:[%s1853_s0 + $0x8] sm:$0xff] }
 0x1c7   :  { %v981_v25 = vpop.permute.xlu0 %980 }
 0x1c8   :  { %v985_v12 = vsel %vm1879_vm1, %v983_v4, %v981_v25  ;;  %v984_v53 = vsel %vm1880_vm3, %v981_v25, %v983_v4  ;;  %v1051_v11 = vpop.permute.xlu2 %1050 }
 0x1c9   :  { %v987_v38 = vsel %vm1881_vm4, %v985_v12, 0.0  ;;  %v995_v34 = vmul.f32 %v993_v26, %v984_v53  ;;  %v999_v63 = vrot.slane %v984_v53, 2  ;;  %v1012_v62 = vrot.slane %v984_v53, 4 }
 0x1ca   :  { %v996_v20 = vmul.f32 %v993_v26, %v987_v38  ;;  %v1000_v22 = vrot.slane %v987_v38, 2  ;;  %v1013_v47 = vrot.slane %v987_v38, 4  ;;  %v1025_v43 = vrot.slane %v984_v53, 6 }
 0x1cb   :  { %v997_v5 = vadd.f32 %v995_v34, %v978_v16  ;;  %v1026_v57 = vrot.slane %v987_v38, 6  ;;  %v1021_v7 = vmul.f32 %v1019_v49, %v1012_v62  ;;  %v1199_v38 = vld [vmem:[%s1853_s0] sm:$0xff] }
 0x1cc   :  { %v998_v39 = vadd.f32 %v996_v20, %v979_v15  ;;  %v1022_v41 = vmul.f32 %v1019_v49, %v1013_v47  ;;  %v1034_v17 = vmul.f32 %v1032_v59, %v1025_v43 }
 0x1cd   :  { %v1035_v55 = vmul.f32 %v1032_v59, %v1026_v57 }
 0x1cf   :  { %v1006_v0 = vpop.permute.xlu0 %1005 }
 0x1d0   :  { %v1008_v30 = vmul.f32 %v1006_v0, %v999_v63  ;;  %v1009_v3 = vmul.f32 %v1006_v0, %v1000_v22  ;;  %v1090_v23 = vpop.permute.xlu2 %1089 }
 0x1d2   :  { %v1010_v50 = vadd.f32 %v1008_v30, %v997_v5  ;;  %v1011_v2 = vadd.f32 %v1009_v3, %v998_v39 }
 0x1d4   :  { %v1023_v56 = vadd.f32 %v1021_v7, %v1010_v50  ;;  %v1024_v13 = vadd.f32 %v1022_v41, %v1011_v2 }
 0x1d6   :  { %v1036_v18 = vadd.f32 %v1034_v17, %v1023_v56  ;;  %v1037_v19 = vadd.f32 %v1035_v55, %v1024_v13 }
 0x1d7   :  { %v1039_v1 = vpop.permute.xlu0 %1038 }
 0x1d8   :  { %v1042_v52 = vsel %vm1882_vm5, %v1039_v1, %v1041_v14  ;;  %v1043_v58 = vsel %vm1883_vm7, %v1041_v14, %v1039_v1 }
 0x1d9   :  { %v1044_v51 = vsel %vm1503_vm6, %v1042_v52, 0.0  ;;  %v1045_v33 = vsel %vm1632_vm15, %v1043_v58, 0.0 }
 0x1da   :  { %v1053_v48 = vmul.f32 %v1051_v11, %v1044_v51  ;;  %v1054_v4 = vmul.f32 %v1051_v11, %v1045_v33  ;;  %v1070_v21 = vrot.slane %v1044_v51, 4  ;;  %v1071_v6 = vrot.slane %v1045_v33, 4 }
 0x1db   :  { %v1057_v26 = vrot.slane %v1044_v51, 2  ;;  %v1058_v37 = vrot.slane %v1045_v33, 2  ;;  %v1083_v28 = vrot.slane %v1044_v51, 6  ;;  %v1084_v8 = vrot.slane %v1045_v33, 6 }
 0x1dc   :  { %v1055_v35 = vadd.f32 %v1053_v48, %v1036_v18  ;;  %v1056_v9 = vadd.f32 %v1054_v4, %v1037_v19  ;;  %v1079_v27 = vmul.f32 %v1077_v29, %v1070_v21  ;;  %v1080_v36 = vmul.f32 %v1077_v29, %v1071_v6 }
 0x1dd   :  { %v1092_v42 = vmul.f32 %v1090_v23, %v1083_v28  ;;  %v1093_v40 = vmul.f32 %v1090_v23, %v1084_v8 }
 0x1df   :  { %v1064_v44 = vpop.permute.xlu0 %1063 }
 0x1e0   :  { %v1066_v60 = vmul.f32 %v1064_v44, %v1057_v26  ;;  %v1067_v46 = vmul.f32 %v1064_v44, %v1058_v37 }
 0x1e2   :  { %v1068_v25 = vadd.f32 %v1066_v60, %v1055_v35  ;;  %v1069_v31 = vadd.f32 %v1067_v46, %v1056_v9 }
 0x1e4   :  { %v1081_v12 = vadd.f32 %v1079_v27, %v1068_v25  ;;  %v1082_v45 = vadd.f32 %v1080_v36, %v1069_v31 }
 0x1e6   :  { %v1094_v24 = vadd.f32 %v1092_v42, %v1081_v12  ;;  %v1095_v53 = vadd.f32 %v1093_v40, %v1082_v45 }
 0x1e8   :  { %v1096_v49 = vadd.f32 %v1199_v38, %v1094_v24  ;;  %v1097_v32 = vadd.f32 %v1200_v61, %v1095_v53 }
 0x1ea   :  { %1098 = vst [vmem:[#allocation2] sm:$0xff] %v1096_v49 }
 0x1eb   :  { %1099 = vst [vmem:[#allocation2 + $0x8] sm:$0xff] %v1097_v32 }
 0x1ec   :  { %1110 = dma.vmem_to_hbm [thread:$0]  %s1106_s14, 256, %s1108_s4, [#allocation3]  }
 0x1ed   :  { %1225 = dma.done.wait [#allocation3], 256  }
 0x1ee   :  { %1226 = vsyncadd [#allocation3], 4294967040 }
 0x1ef   :  { %1115 = vsyncpa [#allocation3], 1 }

</bundles_post_ra>
